<compile_context>
chip_gen: v7x
topology: tpu7x:2x2x1
jax: 0.10.0
libtpu: 0.0.40
codegen_flags: <defaults>
</compile_context>

<pallas_src>
import numpy as np
import jax
import jax.numpy as jnp
from jax.experimental import pallas as pl
from jax.experimental.pallas import tpu as pltpu


# ------------------------------ Pallas kernel -------------------------------

def _simplenet_kernel(x_ref, w1_ref, b1_ref, w2_ref, b2_ref,
                      w3_ref, b3_ref, w4_ref, b4_ref, o_ref):
    """Fused forward for one M-tile: 4 MXU matmuls + f32 epilogue, all in VMEM."""

    def dense(h, w_ref, b_ref):
        # Cast activations to the (possibly bf16) weight dtype for the MXU,
        # accumulate in f32, keep bias/activation epilogue in f32.
        acc = jnp.dot(h.astype(w_ref.dtype), w_ref[...],
                      preferred_element_type=jnp.float32)
        return acc + b_ref[...]

    h = jnp.maximum(dense(x_ref[...], w1_ref, b1_ref), 0.0)   # conv1 + ReLU
    h = jnp.maximum(dense(h, w2_ref, b2_ref), 0.0)            # conv2 + ReLU
    h = jnp.maximum(dense(h, w3_ref, b3_ref), 0.0)            # fc1   + ReLU
    logits = dense(h, w4_ref, b4_ref)                         # fc2

    # Numerically stable log_softmax along classes.
    m = jnp.max(logits, axis=-1, keepdims=True)
    lse = m + jnp.log(jnp.sum(jnp.exp(logits - m), axis=-1, keepdims=True))
    o_ref[...] = logits - lse


# --------------------- init-time weight transformations ---------------------

def _conv_to_gemm(w, b, in_h, in_w, stride, nchw_input):
    """Unroll a (Cout, Cin, k, k) valid-padding strided conv into a dense GEMM.

    Produces (Weff, beff) such that  y_flat = x_flat @ Weff + beff  where
      x_flat is the input flattened channel-major (NCHW reshape) if nchw_input
      else NHWC-flat ((h, w, c)), and
      y_flat is always NHWC-flat ((oh, ow, cout)).
    Runs once at init on the host (numpy); never in the hot path.
    """
    w = np.asarray(w, np.float32)
    b = np.asarray(b, np.float32)
    cout, cin, k, _ = w.shape
    oh = (in_h - k) // stride + 1
    ow = (in_w - k) // stride + 1
    weff = np.zeros((cin * in_h * in_w, oh * ow * cout), np.float32)
    for oy in range(oh):
        for ox in range(ow):
            col = (oy * ow + ox) * cout
            for ky in range(k):
                for kx in range(k):
                    iy = stride * oy + ky
                    ix = stride * ox + kx
                    if nchw_input:
                        rows = np.arange(cin) * (in_h * in_w) + iy * in_w + ix
                    else:
                        rows = (iy * in_w + ix) * cin + np.arange(cin)
                    weff[rows, col:col + cout] += w[:, :, ky, kx].T
    beff = np.tile(b, oh * ow)[None, :]
    return weff, beff, oh, ow


def prepare_params(raw, image_size, mxu_dtype=jnp.float32):
    """One-time transform of PyTorch-layout params into fused-kernel operands.

    mxu_dtype=jnp.bfloat16 selects the native bf16 MXU path (recommended on
    v6e/v7x at scale); biases and all epilogue math remain float32.
    """
    w1, b1, h1, w1s = _conv_to_gemm(raw["conv1_w"], raw["conv1_b"],
                                    image_size, image_size, 2, nchw_input=True)
    w2, b2, h2, w2s = _conv_to_gemm(raw["conv2_w"], raw["conv2_b"],
                                    h1, w1s, 2, nchw_input=False)
    cout2 = raw["conv2_w"].shape[0]

    # Fold PyTorch's channel-major flatten (c, h, w) into fc1's weight so the
    # activations can stay NHWC-flat end to end (identity when spatial is 1x1).
    f1 = np.asarray(raw["fc1_w"], np.float32)
    f1 = f1.reshape(-1, cout2, h2, w2s).transpose(0, 2, 3, 1).reshape(f1.shape[0], -1)
    w3 = f1.T
    w4 = np.asarray(raw["fc2_w"], np.float32).T

    as_mxu = lambda a: jnp.asarray(np.asarray(a, np.float32), mxu_dtype)
    as_f32 = lambda a: jnp.asarray(np.asarray(a, np.float32))
    return {
        "w1": as_mxu(w1), "b1": as_f32(b1),
        "w2": as_mxu(w2), "b2": as_f32(b2),
        "w3": as_mxu(w3), "b3": as_f32(np.asarray(raw["fc1_b"], np.float32)[None, :]),
        "w4": as_mxu(w4), "b4": as_f32(np.asarray(raw["fc2_b"], np.float32)[None, :]),
    }


# --------------------------------- wrapper ----------------------------------

_MAX_BLOCK_M = 256  # rows per grid step once the batch is large enough to tile


def _block_m(m):
    return m if m <= _MAX_BLOCK_M else _MAX_BLOCK_M


def simplenet_forward(params, x):
    """x: (N, Cin, H, W) float32 -> (N, num_classes) log-probabilities."""
    n = x.shape[0]
    x_flat = x.reshape(n, -1)                 # contiguous NCHW flatten (no relayout)
    din = x_flat.shape[1]
    ncls = params["w4"].shape[1]
    bm = _block_m(n)

    def resident(a):                          # whole array, same block every step
        return pl.BlockSpec(a.shape, lambda i: (0,) * a.ndim)

    weight_args = (params["w1"], params["b1"], params["w2"], params["b2"],
                   params["w3"], params["b3"], params["w4"], params["b4"])

    return pl.pallas_call(
        _simplenet_kernel,
        out_shape=jax.ShapeDtypeStruct((n, ncls), jnp.float32),
        grid=(pl.cdiv(n, bm),),
        in_specs=[pl.BlockSpec((bm, din), lambda i: (i, 0))]
                 + [resident(a) for a in weight_args],
        out_specs=pl.BlockSpec((bm, ncls), lambda i: (i, 0)),
        compiler_params=pltpu.CompilerParams(dimension_semantics=("parallel",)),
    )(x_flat, *weight_args)


# ------------------------------ initialization ------------------------------

def init_simplenet_params(key, input_features, output_classes, image_size):
    """Deterministic init mimicking PyTorch defaults (uniform(-1/sqrt(fan_in), +))."""
    def uniform(k, shape, fan_in):
        bound = 1.0 / np.sqrt(float(fan_in))
        return jax.random.uniform(k, shape, jnp.float32, -bound, bound)

    s1 = (image_size - 5) // 2 + 1
    s2 = (s1 - 5) // 2 + 1
    flat = 20 * s2 * s2

    ks = jax.random.split(key, 8)
    return {
        "conv1_w": uniform(ks[0], (10, input_features, 5, 5), input_features * 25),
        "conv1_b": uniform(ks[1], (10,), input_features * 25),
        "conv2_w": uniform(ks[2], (20, 10, 5, 5), 10 * 25),
        "conv2_b": uniform(ks[3], (20,), 10 * 25),
        "fc1_w":   uniform(ks[4], (50, flat), flat),
        "fc1_b":   uniform(ks[5], (50,), flat),
        "fc2_w":   uniform(ks[6], (output_classes, 50), 50),
        "fc2_b":   uniform(ks[7], (output_classes,), 50),
    }


# ------------------------- plain-JAX reference check -------------------------

def _reference_forward(raw, x):
    hi = jax.lax.Precision.HIGHEST

    def conv(y, w, b):
        y = jax.lax.conv_general_dilated(
            y, w, window_strides=(2, 2), padding="VALID",
            dimension_numbers=("NCHW", "OIHW", "NCHW"), precision=hi)
        return jax.nn.relu(y + b[None, :, None, None])

    y = conv(x, raw["conv1_w"], raw["conv1_b"])
    y = conv(y, raw["conv2_w"], raw["conv2_b"])
    y = y.reshape(y.shape[0], -1)
    y = jax.nn.relu(jnp.dot(y, raw["fc1_w"].T, precision=hi) + raw["fc1_b"])
    y = jnp.dot(y, raw["fc2_w"].T, precision=hi) + raw["fc2_b"]
    return jax.nn.log_softmax(y, axis=-1)


# ----------------------------------- main ------------------------------------

if __name__ == "__main__":
    INPUT_FEATURES = 4
    OUTPUT_CLASSES = 10
    IMAGE_SIZE = 16
    BATCH = 2

    key = jax.random.PRNGKey(0)
    k_params, k_x = jax.random.split(key)
    raw_params = init_simplenet_params(k_params, INPUT_FEATURES, OUTPUT_CLASSES, IMAGE_SIZE)
    # mxu_dtype=jnp.bfloat16 enables the native bf16 MXU path on v6e/v7x.
    params = prepare_params(raw_params, IMAGE_SIZE, mxu_dtype=jnp.float32)

    x = jax.random.normal(k_x, (BATCH, INPUT_FEATURES, IMAGE_SIZE, IMAGE_SIZE), jnp.float32)

    fwd = jax.jit(simplenet_forward)
    out = jax.block_until_ready(fwd(params, x))

    assert out.shape == (BATCH, OUTPUT_CLASSES)
    # log_softmax rows exponentiate-sum to ~1
    assert jnp.allclose(jnp.sum(jnp.exp(out), axis=1), 1.0, atol=1e-4)
    # matches a plain-JAX (lax.conv) reference of the original module
    ref = jax.block_until_ready(jax.jit(_reference_forward)(raw_params, x))
    assert jnp.allclose(out, ref, atol=5e-2, rtol=5e-2)

    print("KERNEL_OK")
</pallas_src>

<mosaic_0001>
module attributes {stable_mosaic.version = 11 : i64} {
  func.func @_simplenet_kernel(%arg0: i32, %arg1: memref<2x1024xf32, #tpu.memory_space<vmem>>, %arg2: memref<1024x360xf32, #tpu.memory_space<vmem>>, %arg3: memref<1x360xf32, #tpu.memory_space<vmem>>, %arg4: memref<360x20xf32, #tpu.memory_space<vmem>>, %arg5: memref<1x20xf32, #tpu.memory_space<vmem>>, %arg6: memref<20x50xf32, #tpu.memory_space<vmem>>, %arg7: memref<1x50xf32, #tpu.memory_space<vmem>>, %arg8: memref<50x10xf32, #tpu.memory_space<vmem>>, %arg9: memref<1x10xf32, #tpu.memory_space<vmem>>, %arg10: memref<2x10xf32, #tpu.memory_space<vmem>>) attributes {dimension_semantics = [#tpu.dimension_semantics<parallel>], iteration_bounds = array<i64: 1>, scalar_prefetch = 0 : i64, scratch_operands = 0 : i64, tpu.core_type = #tpu.core_type<tc>, window_params = [{transform_indices = @transform_0, window_bounds = array<i64: 2, 1024>}, {pipeline_mode = #tpu.pipeline_mode<synchronous>, transform_indices = @transform_1, window_bounds = array<i64: 1024, 360>}, {pipeline_mode = #tpu.pipeline_mode<synchronous>, transform_indices = @transform_2, window_bounds = array<i64: 1, 360>}, {pipeline_mode = #tpu.pipeline_mode<synchronous>, transform_indices = @transform_3, window_bounds = array<i64: 360, 20>}, {pipeline_mode = #tpu.pipeline_mode<synchronous>, transform_indices = @transform_4, window_bounds = array<i64: 1, 20>}, {pipeline_mode = #tpu.pipeline_mode<synchronous>, transform_indices = @transform_5, window_bounds = array<i64: 20, 50>}, {pipeline_mode = #tpu.pipeline_mode<synchronous>, transform_indices = @transform_6, window_bounds = array<i64: 1, 50>}, {pipeline_mode = #tpu.pipeline_mode<synchronous>, transform_indices = @transform_7, window_bounds = array<i64: 50, 10>}, {pipeline_mode = #tpu.pipeline_mode<synchronous>, transform_indices = @transform_8, window_bounds = array<i64: 1, 10>}, {transform_indices = @transform_9, window_bounds = array<i64: 2, 10>}]} {
    %c0 = arith.constant 0 : index
    %c0_0 = arith.constant 0 : index
    %0 = vector.load %arg1[%c0, %c0_0] : memref<2x1024xf32, #tpu.memory_space<vmem>>, vector<2x1024xf32>
    %c0_1 = arith.constant 0 : index
    %c0_2 = arith.constant 0 : index
    %1 = vector.load %arg2[%c0_1, %c0_2] : memref<1024x360xf32, #tpu.memory_space<vmem>>, vector<1024x360xf32>
    %cst = arith.constant dense<0.000000e+00> : vector<2x360xf32>
    %2 = tpu.matmul %0, %1, %cst {dimension_numbers = #tpu.dot_dimension_numbers<[1], [0], [0], [1], [0, 0, 1, 1], [], []>} : vector<2x1024xf32>, vector<1024x360xf32>, vector<2x360xf32> -> vector<2x360xf32>
    %c0_3 = arith.constant 0 : index
    %c0_4 = arith.constant 0 : index
    %3 = vector.load %arg3[%c0_3, %c0_4] : memref<1x360xf32, #tpu.memory_space<vmem>>, vector<1x360xf32>
    %4 = vector.broadcast %3 : vector<1x360xf32> to vector<2x360xf32>
    %5 = arith.addf %2, %4 : vector<2x360xf32>
    %cst_5 = arith.constant 0.000000e+00 : f32
    %6 = vector.broadcast %cst_5 : f32 to vector<2x360xf32>
    %7 = arith.maximumf %5, %6 : vector<2x360xf32>
    %c0_6 = arith.constant 0 : index
    %c0_7 = arith.constant 0 : index
    %8 = vector.load %arg4[%c0_6, %c0_7] : memref<360x20xf32, #tpu.memory_space<vmem>>, vector<360x20xf32>
    %cst_8 = arith.constant dense<0.000000e+00> : vector<2x20xf32>
    %9 = tpu.matmul %7, %8, %cst_8 {dimension_numbers = #tpu.dot_dimension_numbers<[1], [0], [0], [1], [0, 0, 1, 1], [], []>} : vector<2x360xf32>, vector<360x20xf32>, vector<2x20xf32> -> vector<2x20xf32>
    %c0_9 = arith.constant 0 : index
    %c0_10 = arith.constant 0 : index
    %10 = vector.load %arg5[%c0_9, %c0_10] : memref<1x20xf32, #tpu.memory_space<vmem>>, vector<1x20xf32>
    %11 = vector.broadcast %10 : vector<1x20xf32> to vector<2x20xf32>
    %12 = arith.addf %9, %11 : vector<2x20xf32>
    %cst_11 = arith.constant 0.000000e+00 : f32
    %13 = vector.broadcast %cst_11 : f32 to vector<2x20xf32>
    %14 = arith.maximumf %12, %13 : vector<2x20xf32>
    %c0_12 = arith.constant 0 : index
    %c0_13 = arith.constant 0 : index
    %15 = vector.load %arg6[%c0_12, %c0_13] : memref<20x50xf32, #tpu.memory_space<vmem>>, vector<20x50xf32>
    %cst_14 = arith.constant dense<0.000000e+00> : vector<2x50xf32>
    %16 = tpu.matmul %14, %15, %cst_14 {dimension_numbers = #tpu.dot_dimension_numbers<[1], [0], [0], [1], [0, 0, 1, 1], [], []>} : vector<2x20xf32>, vector<20x50xf32>, vector<2x50xf32> -> vector<2x50xf32>
    %c0_15 = arith.constant 0 : index
    %c0_16 = arith.constant 0 : index
    %17 = vector.load %arg7[%c0_15, %c0_16] : memref<1x50xf32, #tpu.memory_space<vmem>>, vector<1x50xf32>
    %18 = vector.broadcast %17 : vector<1x50xf32> to vector<2x50xf32>
    %19 = arith.addf %16, %18 : vector<2x50xf32>
    %cst_17 = arith.constant 0.000000e+00 : f32
    %20 = vector.broadcast %cst_17 : f32 to vector<2x50xf32>
    %21 = arith.maximumf %19, %20 : vector<2x50xf32>
    %c0_18 = arith.constant 0 : index
    %c0_19 = arith.constant 0 : index
    %22 = vector.load %arg8[%c0_18, %c0_19] : memref<50x10xf32, #tpu.memory_space<vmem>>, vector<50x10xf32>
    %cst_20 = arith.constant dense<0.000000e+00> : vector<2x10xf32>
    %23 = tpu.matmul %21, %22, %cst_20 {dimension_numbers = #tpu.dot_dimension_numbers<[1], [0], [0], [1], [0, 0, 1, 1], [], []>} : vector<2x50xf32>, vector<50x10xf32>, vector<2x10xf32> -> vector<2x10xf32>
    %c0_21 = arith.constant 0 : index
    %c0_22 = arith.constant 0 : index
    %24 = vector.load %arg9[%c0_21, %c0_22] : memref<1x10xf32, #tpu.memory_space<vmem>>, vector<1x10xf32>
    %25 = vector.broadcast %24 : vector<1x10xf32> to vector<2x10xf32>
    %26 = arith.addf %23, %25 : vector<2x10xf32>
    %cst_23 = arith.constant dense<0xFF800000> : vector<2xf32>
    %27 = vector.multi_reduction <maximumf>, %26, %cst_23 [1] : vector<2x10xf32> to vector<2xf32>
    %28 = vector.shape_cast %27 : vector<2xf32> to vector<2x1xf32>
    %29 = vector.broadcast %28 : vector<2x1xf32> to vector<2x10xf32>
    %30 = arith.subf %26, %29 : vector<2x10xf32>
    %31 = math.exp %30 : vector<2x10xf32>
    %cst_24 = arith.constant dense<0.000000e+00> : vector<2xf32>
    %32 = vector.multi_reduction <add>, %31, %cst_24 [1] : vector<2x10xf32> to vector<2xf32>
    %33 = vector.shape_cast %32 : vector<2xf32> to vector<2x1xf32>
    %34 = math.log %33 : vector<2x1xf32>
    %35 = arith.addf %28, %34 : vector<2x1xf32>
    %36 = vector.broadcast %35 : vector<2x1xf32> to vector<2x10xf32>
    %37 = arith.subf %26, %36 : vector<2x10xf32>
    %c0_25 = arith.constant 0 : index
    %c0_26 = arith.constant 0 : index
    %38 = vector.load %arg10[%c0_25, %c0_26] : memref<2x10xf32, #tpu.memory_space<vmem>>, vector<2x10xf32>
    tpu.vector_store %arg10[%c0_25, %c0_26], %37 {strides = array<i32>} : memref<2x10xf32, #tpu.memory_space<vmem>>, vector<2x10xf32>,
    return
  }
  func.func @transform_0(%arg0: i32) -> (i32, i32) {
    %c0_i32 = arith.constant 0 : i32
    %c0_i32_0 = arith.constant 0 : i32
    return %arg0, %c0_i32 : i32, i32
  }
  func.func @transform_1(%arg0: i32) -> (i32, i32) {
    %c0_i32 = arith.constant 0 : i32
    %c0_i32_0 = arith.constant 0 : i32
    %c0_i32_1 = arith.constant 0 : i32
    return %c0_i32, %c0_i32_0 : i32, i32
  }
  func.func @transform_2(%arg0: i32) -> (i32, i32) {
    %c0_i32 = arith.constant 0 : i32
    %c0_i32_0 = arith.constant 0 : i32
    %c0_i32_1 = arith.constant 0 : i32
    return %c0_i32, %c0_i32_0 : i32, i32
  }
  func.func @transform_3(%arg0: i32) -> (i32, i32) {
    %c0_i32 = arith.constant 0 : i32
    %c0_i32_0 = arith.constant 0 : i32
    %c0_i32_1 = arith.constant 0 : i32
    return %c0_i32, %c0_i32_0 : i32, i32
  }
  func.func @transform_4(%arg0: i32) -> (i32, i32) {
    %c0_i32 = arith.constant 0 : i32
    %c0_i32_0 = arith.constant 0 : i32
    %c0_i32_1 = arith.constant 0 : i32
    return %c0_i32, %c0_i32_0 : i32, i32
  }
  func.func @transform_5(%arg0: i32) -> (i32, i32) {
    %c0_i32 = arith.constant 0 : i32
    %c0_i32_0 = arith.constant 0 : i32
    %c0_i32_1 = arith.constant 0 : i32
    return %c0_i32, %c0_i32_0 : i32, i32
  }
  func.func @transform_6(%arg0: i32) -> (i32, i32) {
    %c0_i32 = arith.constant 0 : i32
    %c0_i32_0 = arith.constant 0 : i32
    %c0_i32_1 = arith.constant 0 : i32
    return %c0_i32, %c0_i32_0 : i32, i32
  }
  func.func @transform_7(%arg0: i32) -> (i32, i32) {
    %c0_i32 = arith.constant 0 : i32
    %c0_i32_0 = arith.constant 0 : i32
    %c0_i32_1 = arith.constant 0 : i32
    return %c0_i32, %c0_i32_0 : i32, i32
  }
  func.func @transform_8(%arg0: i32) -> (i32, i32) {
    %c0_i32 = arith.constant 0 : i32
    %c0_i32_0 = arith.constant 0 : i32
    %c0_i32_1 = arith.constant 0 : i32
    return %c0_i32, %c0_i32_0 : i32, i32
  }
  func.func @transform_9(%arg0: i32) -> (i32, i32) {
    %c0_i32 = arith.constant 0 : i32
    %c0_i32_0 = arith.constant 0 : i32
    return %arg0, %c0_i32 : i32, i32
  }
}

</mosaic_0001>

<bundles_post_ra>
// kernel: simplenet_forward.1
= control target key start
LH: loop header
LB: loop body
LE: loop exit
PB: predicated region body
PF: predicated region fallthrough
CT: control target
= control target key end

     0   :  { %v421_v25 = vlaneseq  ;;  %v2207_v26 = vmov 1983009808   ;;  %s3685_s0 = inlined_call_operand.vmem [shape: f32[2,1024], index: 0, kind: input, shape index: {}]   ;;  %s3686_s1 = inlined_call_operand.vmem [shape: f32[1024,360], index: 1, kind: input, shape index: {}]   ;;  %s3687_s2 = inlined_call_operand.vmem [shape: f32[1,360], index: 2, kind: input, shape index: {}]   ;;  %s3688_s3 = inlined_call_operand.vmem [shape: f32[360,20], index: 3, kind: input, shape index: {}]   ;;  %s3689_s4 = inlined_call_operand.vmem [shape: f32[1,20], index: 4, kind: input, shape index: {}]   ;;  %s3690_s5 = inlined_call_operand.vmem [shape: f32[20,50], index: 5, kind: input, shape index: {}]   ;;  %s3691_s6 = inlined_call_operand.vmem [shape: f32[1,50], index: 6, kind: input, shape index: {}]   ;;  %s3692_s7 = inlined_call_operand.vmem [shape: f32[50,10], index: 7, kind: input, shape index: {}]   ;;  %s3693_s8 = inlined_call_operand.vmem [shape: f32[1,10], index: 8, kind: input, shape index: {}]   ;;  %s3694_s9 = inlined_call_operand.hbm [shape: f32[2,10], index: 9, kind: output, shape index: {}]  }
   0x1   :  { %v36_v0 = vld [vmem:[%s3686_s1 + $0x8] sm:$0xff]  ;;  %v39_v1 = vld [vmem:[%s3686_s1 + $0x20] sm:$0xff]  ;;  %v38_v4 = vld [vmem:[%s3686_s1 + $0x18] sm:$0xff]  ;;  %v440_v27 = vunpack.c.l.s4 %v2207_v26 }
   0x2   :  { %v35_v2 = vld [vmem:[%s3686_s1] sm:$0xff]  ;;  %v1718_v3 = vpack.c.bf16 %v39_v1, %v36_v0  ;;  %v42_v5 = vld [vmem:[%s3686_s1 + $0x38] sm:$0xff]  ;;  %v45_v6 = vld [vmem:[%s3686_s1 + $0x50] sm:$0xff]  ;;  %v2328_v34 = vshrl.u32 %v421_v25, 7 }
   0x3   :  { %v1720_v7 = vpack.c.bf16 %v38_v4, %v35_v2  ;;  %v1722_v8 = vpack.c.bf16 %v45_v6, %v42_v5  ;;  %v41_v9 = vld [vmem:[%s3686_s1 + $0x30] sm:$0xff]  ;;  %v44_v10 = vld [vmem:[%s3686_s1 + $0x48] sm:$0xff]  ;;  %v51_v12 = vld [vmem:[%s3686_s1 + $0x80] sm:$0xff]  ;;  %v441_v35 = vunpack.c.0.s8 %v440_v27 }
   0x4   :  { %v48_v11 = vld [vmem:[%s3686_s1 + $0x68] sm:$0xff]  ;;  %1719 = vmatprep.subr.bf16.mxu0 %v1718_v3  ;;  %v1724_v13 = vpack.c.bf16 %v44_v10, %v41_v9  ;;  %v47_v15 = vld [vmem:[%s3686_s1 + $0x60] sm:$0xff]  ;;  %v50_v16 = vld [vmem:[%s3686_s1 + $0x78] sm:$0xff] }
   0x5   :  { %1721 = vmatpush1.bf16.msra.mxu0 %v1720_v7  ;;  %v1726_v14 = vpack.c.bf16 %v51_v12, %v48_v11  ;;  %v54_v17 = vld [vmem:[%s3686_s1 + $0x98] sm:$0xff]  ;;  %v57_v18 = vld [vmem:[%s3686_s1 + $0xb0] sm:$0xff]  ;;  %v1728_v19 = vpack.c.bf16 %v50_v16, %v47_v15  ;;  %v56_v22 = vld [vmem:[%s3686_s1 + $0xa8] sm:$0xff]  ;;  %v2343_v42 = vsub.s32 %v441_v35, %v2328_v34 }
   0x6   :  { %1723 = vmatprep.subr.bf16.mxu0 %v1722_v8  ;;  %v1730_v20 = vpack.c.bf16 %v57_v18, %v54_v17  ;;  %v53_v21 = vld [vmem:[%s3686_s1 + $0x90] sm:$0xff]  ;;  %v60_v23 = vld [vmem:[%s3686_s1 + $0xc8] sm:$0xff]  ;;  %v63_v24 = vld [vmem:[%s3686_s1 + $0xe0] sm:$0xff] }
   0x7   :  { %v1732_v28 = vpack.c.bf16 %v56_v22, %v53_v21  ;;  %v1734_v29 = vpack.c.bf16 %v63_v24, %v60_v23  ;;  %v59_v30 = vld [vmem:[%s3686_s1 + $0xc0] sm:$0xff]  ;;  %v62_v31 = vld [vmem:[%s3686_s1 + $0xd8] sm:$0xff]  ;;  %v69_v33 = vld [vmem:[%s3686_s1 + $0x110] sm:$0xff] }
   0x8   :  { %v66_v32 = vld [vmem:[%s3686_s1 + $0xf8] sm:$0xff]  ;;  %v1736_v36 = vpack.c.bf16 %v62_v31, %v59_v30  ;;  %v65_v38 = vld [vmem:[%s3686_s1 + $0xf0] sm:$0xff]  ;;  %v68_v39 = vld [vmem:[%s3686_s1 + $0x108] sm:$0xff] }
   0x9   :  { %1725 = vmatpush1.bf16.msra.mxu0 %v1724_v13  ;;  %v1738_v37 = vpack.c.bf16 %v69_v33, %v66_v32  ;;  %v72_v40 = vld [vmem:[%s3686_s1 + $0x128] sm:$0xff]  ;;  %v75_v41 = vld [vmem:[%s3686_s1 + $0x140] sm:$0xff]  ;;  %v1740_v43 = vpack.c.bf16 %v68_v39, %v65_v38  ;;  %v74_v45 = vld [vmem:[%s3686_s1 + $0x138] sm:$0xff] }
   0xa   :  { %1727 = vmatprep.subr.bf16.mxu0 %v1726_v14  ;;  %v71_v44 = vld [vmem:[%s3686_s1 + $0x120] sm:$0xff]  ;;  %v78_v46 = vld [vmem:[%s3686_s1 + $0x158] sm:$0xff]  ;;  %v1742_v47 = vpack.c.bf16 %v75_v41, %v72_v40  ;;  %v81_v48 = vld [vmem:[%s3686_s1 + $0x170] sm:$0xff] }
   0xb   :  { %v85_v49 = vld [vmem:[%s3686_s1 + $0x190] sm:$0xff]  ;;  %v88_v50 = vld [vmem:[%s3686_s1 + $0x1a8] sm:$0xff]  ;;  %v2372_v54 = vld [vmem:[%s3685_s0] sm:$0xff]  ;;  %v1744_v57 = vpack.c.bf16 %v74_v45, %v71_v44  ;;  %v1746_v61 = vpack.c.bf16 %v81_v48, %v78_v46 }
   0xc   :  { %v1974_v51 = vpack.c.bf16 %v88_v50, %v85_v49  ;;  %v37_v52 = vld [vmem:[%s3686_s1 + $0x10] sm:$0xff]  ;;  %v40_v53 = vld [vmem:[%s3686_s1 + $0x28] sm:$0xff]  ;;  %v2376_v56 = vrot.slane %v2372_v54, %v2343_v42  ;;  %v91_v59 = vld [vmem:[%s3686_s1 + $0x1c0] sm:$0xff] }
   0xd   :  { %1729 = vmatpush1.bf16.msra.mxu0 %v1728_v19  ;;  %v1976_v55 = vpack.c.bf16 %v40_v53, %v37_v52  ;;  %v77_v58 = vld [vmem:[%s3686_s1 + $0x150] sm:$0xff]  ;;  %v94_v60 = vld [vmem:[%s3686_s1 + $0x1d8] sm:$0xff]  ;;  %v80_v62 = vld [vmem:[%s3686_s1 + $0x168] sm:$0xff] }
   0xe   :  { %1731 = vmatprep.subr.bf16.mxu0 %v1730_v20  ;;  %1975 = vmatprep.subr.bf16.mxu1 %v1974_v51  ;;  %v453_v63 = vcombine.high %v2376_v56, %v2376_v56  ;;  %v1978_v0 = vpack.c.bf16 %v94_v60, %v91_v59  ;;  %v43_v1 = vld [vmem:[%s3686_s1 + $0x40] sm:$0xff]  ;;  %v46_v2 = vld [vmem:[%s3686_s1 + $0x58] sm:$0xff]  ;;  %v84_v3 = vld [vmem:[%s3686_s1 + $0x188] sm:$0xff]  ;;  %v1748_v9 = vpack.c.bf16 %v80_v62, %v77_v58 }
   0xf   :  { %1977 = vmatpush3.bf16.msra.mxu1 %v1976_v55  ;;  %v87_v4 = vld [vmem:[%s3686_s1 + $0x1a0] sm:$0xff]  ;;  %v1980_v5 = vpack.c.bf16 %v46_v2, %v43_v1  ;;  %v97_v6 = vld [vmem:[%s3686_s1 + $0x1f0] sm:$0xff]  ;;  %v100_v7 = vld [vmem:[%s3686_s1 + $0x208] sm:$0xff] }
  0x10   :  { %544 = vmatprep.mubr.f32.mxu0 %v453_v63  ;;  %1979 = vmatprep.subr.bf16.mxu1 %v1978_v0  ;;  %v49_v8 = vld [vmem:[%s3686_s1 + $0x70] sm:$0xff]  ;;  %v83_v10 = vld [vmem:[%s3686_s1 + $0x180] sm:$0xff]  ;;  %v86_v11 = vld [vmem:[%s3686_s1 + $0x198] sm:$0xff]  ;;  %v1982_v12 = vpack.c.bf16 %v100_v7, %v97_v6  ;;  %v1750_v14 = vpack.c.bf16 %v87_v4, %v84_v3 }
  0x11   :  { %1733 = vmatpush1.bf16.msra.mxu0 %v1732_v28  ;;  %v52_v13 = vld [vmem:[%s3686_s1 + $0x88] sm:$0xff]  ;;  %828 = vmatprep.mubr.f32.mxu1 %v453_v63  ;;  %v90_v15 = vld [vmem:[%s3686_s1 + $0x1b8] sm:$0xff]  ;;  %v93_v16 = vld [vmem:[%s3686_s1 + $0x1d0] sm:$0xff]  ;;  %v1752_v23 = vpack.c.bf16 %v86_v11, %v83_v10 }
  0x12   :  { %1735 = vmatprep.subr.bf16.mxu0 %v1734_v29  ;;  %v1984_v17 = vpack.c.bf16 %v52_v13, %v49_v8  ;;  %v103_v18 = vld [vmem:[%s3686_s1 + $0x220] sm:$0xff]  ;;  %v106_v19 = vld [vmem:[%s3686_s1 + $0x238] sm:$0xff]  ;;  %v109_v24 = vld [vmem:[%s3686_s1 + $0x250] sm:$0xff]  ;;  %v1754_v26 = vpack.c.bf16 %v93_v16, %v90_v15  ;;  %v438_v8 = vcombine.high %v2372_v54, %v2372_v54 }
  0x13   :  { %1981 = vmatpush3.bf16.msra.mxu1 %v1980_v5  ;;  %v55_v20 = vld [vmem:[%s3686_s1 + $0xa0] sm:$0xff]  ;;  %v58_v21 = vld [vmem:[%s3686_s1 + $0xb8] sm:$0xff]  ;;  %v1986_v22 = vpack.c.bf16 %v106_v19, %v103_v18  ;;  %v112_v25 = vld [vmem:[%s3686_s1 + $0x268] sm:$0xff] }
  0x14   :  { %1983 = vmatprep.subr.bf16.mxu1 %v1982_v12  ;;  %v89_v27 = vld [vmem:[%s3686_s1 + $0x1b0] sm:$0xff]  ;;  %v92_v28 = vld [vmem:[%s3686_s1 + $0x1c8] sm:$0xff]  ;;  %v1988_v30 = vpack.c.bf16 %v58_v21, %v55_v20  ;;  %v99_v31 = vld [vmem:[%s3686_s1 + $0x200] sm:$0xff]  ;;  %v1990_v32 = vpack.c.bf16 %v112_v25, %v109_v24 }
  0x15   :  { %1737 = vmatpush1.bf16.msra.mxu0 %v1736_v36  ;;  %v96_v29 = vld [vmem:[%s3686_s1 + $0x1e8] sm:$0xff]  ;;  %v61_v33 = vld [vmem:[%s3686_s1 + $0xd0] sm:$0xff]  ;;  %v115_v36 = vld [vmem:[%s3686_s1 + $0x280] sm:$0xff]  ;;  %v1756_v38 = vpack.c.bf16 %v92_v28, %v89_v27 }
  0x16   :  { %1739 = vmatprep.subr.bf16.mxu0 %v1738_v37  ;;  %v64_v35 = vld [vmem:[%s3686_s1 + $0xe8] sm:$0xff]  ;;  %v118_v37 = vld [vmem:[%s3686_s1 + $0x298] sm:$0xff]  ;;  %v1758_v39 = vpack.c.bf16 %v99_v31, %v96_v29  ;;  %v95_v40 = vld [vmem:[%s3686_s1 + $0x1e0] sm:$0xff] }
  0x17   :  { %1985 = vmatpush3.bf16.msra.mxu1 %v1984_v17  ;;  %v98_v41 = vld [vmem:[%s3686_s1 + $0x1f8] sm:$0xff]  ;;  %v1992_v44 = vpack.c.bf16 %v64_v35, %v61_v33  ;;  %v105_v45 = vld [vmem:[%s3686_s1 + $0x230] sm:$0xff]  ;;  %v1994_v46 = vpack.c.bf16 %v118_v37, %v115_v36  ;;  %v124_v50 = vld [vmem:[%s3686_s1 + $0x2c8] sm:$0xff] }
  0x18   :  { %1987 = vmatprep.subr.bf16.mxu1 %v1986_v22  ;;  %v70_v48 = vld [vmem:[%s3686_s1 + $0x118] sm:$0xff]  ;;  %v121_v49 = vld [vmem:[%s3686_s1 + $0x2b0] sm:$0xff]  ;;  %v1760_v51 = vpack.c.bf16 %v98_v41, %v95_v40  ;;  %v104_v55 = vld [vmem:[%s3686_s1 + $0x228] sm:$0xff] }
  0x19   :  { %1741 = vmatpush1.bf16.msra.mxu0 %v1740_v43  ;;  %v102_v43 = vld [vmem:[%s3686_s1 + $0x218] sm:$0xff]  ;;  %v101_v53 = vld [vmem:[%s3686_s1 + $0x210] sm:$0xff]  ;;  %v111_v59 = vld [vmem:[%s3686_s1 + $0x260] sm:$0xff]  ;;  %v1998_v60 = vpack.c.bf16 %v124_v50, %v121_v49 }
  0x1a   :  { %1743 = vmatprep.subr.bf16.mxu0 %v1742_v47  ;;  %v67_v47 = vld [vmem:[%s3686_s1 + $0x100] sm:$0xff]  ;;  %v1762_v52 = vpack.c.bf16 %v105_v45, %v102_v43  ;;  %v76_v62 = vld [vmem:[%s3686_s1 + $0x148] sm:$0xff]  ;;  %v130_v0 = vld [vmem:[%s3686_s1 + $0x2f8] sm:$0xff]  ;;  %v1764_v1 = vpack.c.bf16 %v104_v55, %v101_v53 }
  0x1b   :  { %1989 = vmatpush3.bf16.msra.mxu1 %v1988_v30  ;;  %v1996_v58 = vpack.c.bf16 %v70_v48, %v67_v47  ;;  %v127_v63 = vld [vmem:[%s3686_s1 + $0x2e0] sm:$0xff]  ;;  %v110_v4 = vld [vmem:[%s3686_s1 + $0x258] sm:$0xff]  ;;  %v117_v7 = vld [vmem:[%s3686_s1 + $0x290] sm:$0xff] }
  0x1c   :  { %1991 = vmatprep.subr.bf16.mxu1 %v1990_v32  ;;  %v107_v3 = vld [vmem:[%s3686_s1 + $0x240] sm:$0xff]  ;;  %v114_v5 = vld [vmem:[%s3686_s1 + $0x278] sm:$0xff]  ;;  %v181_v12 = vld [vmem:[%s3686_s1 + $0x490] sm:$0xff] }
  0x1d   :  { %1745 = vmatpush1.bf16.msra.mxu0 %v1744_v57  ;;  %v108_v57 = vld [vmem:[%s3686_s1 + $0x248] sm:$0xff]  ;;  %v79_v10 = vld [vmem:[%s3686_s1 + $0x160] sm:$0xff]  ;;  %v82_v11 = vld [vmem:[%s3686_s1 + $0x178] sm:$0xff]  ;;  %v1768_v54 = vpack.c.bf16 %v110_v4, %v107_v3 }
  0x1e   :  { %1747 = vmatprep.subr.bf16.mxu0 %v1746_v61  ;;  %v73_v61 = vld [vmem:[%s3686_s1 + $0x130] sm:$0xff]  ;;  %v1766_v2 = vpack.c.bf16 %v111_v59, %v108_v57  ;;  %v184_v13 = vld [vmem:[%s3686_s1 + $0x4a8] sm:$0xff]  ;;  %v2004_v18 = vpack.c.bf16 %v82_v11, %v79_v10  ;;  %v123_v19 = vld [vmem:[%s3686_s1 + $0x2c0] sm:$0xff] }
  0x1f   :  { %1993 = vmatpush3.bf16.msra.mxu1 %v1992_v44  ;;  %v2000_v6 = vpack.c.bf16 %v76_v62, %v73_v61  ;;  %v113_v15 = vld [vmem:[%s3686_s1 + $0x270] sm:$0xff]  ;;  %v116_v16 = vld [vmem:[%s3686_s1 + $0x288] sm:$0xff]  ;;  %v2006_v20 = vpack.c.bf16 %v184_v13, %v181_v12  ;;  %v187_v24 = vld [vmem:[%s3686_s1 + $0x4c0] sm:$0xff] }
  0x20   :  { %1995 = vmatprep.subr.bf16.mxu1 %v1994_v46  ;;  %v120_v17 = vld [vmem:[%s3686_s1 + $0x2a8] sm:$0xff]  ;;  %v133_v21 = vld [vmem:[%s3686_s1 + $0x310] sm:$0xff]  ;;  %v190_v25 = vld [vmem:[%s3686_s1 + $0x4d8] sm:$0xff] }
  0x21   :  { %1749 = vmatpush1.bf16.msra.mxu0 %v1748_v9  ;;  %v2002_v9 = vpack.c.bf16 %v130_v0, %v127_v63  ;;  %v136_v22 = vld [vmem:[%s3686_s1 + $0x328] sm:$0xff]  ;;  %v1774_v27 = vpack.c.bf16 %v123_v19, %v120_v17  ;;  %v119_v28 = vld [vmem:[%s3686_s1 + $0x2a0] sm:$0xff]  ;;  %v122_v29 = vld [vmem:[%s3686_s1 + $0x2b8] sm:$0xff]  ;;  %v2010_v33 = vpack.c.bf16 %v190_v25, %v187_v24 }
  0x22   :  { %1751 = vmatprep.subr.bf16.mxu0 %v1750_v14  ;;  %v1770_v14 = vpack.c.bf16 %v117_v7, %v114_v5  ;;  %v126_v30 = vld [vmem:[%s3686_s1 + $0x2d8] sm:$0xff]  ;;  %v2008_v31 = vpack.c.bf16 %v136_v22, %v133_v21  ;;  %v129_v32 = vld [vmem:[%s3686_s1 + $0x2f0] sm:$0xff]  ;;  %v139_v35 = vld [vmem:[%s3686_s1 + $0x340] sm:$0xff]  ;;  %v1776_v40 = vpack.c.bf16 %v122_v29, %v119_v28 }
  0x23   :  { %1997 = vmatpush3.bf16.msra.mxu1 %v1996_v58  ;;  %v142_v36 = vld [vmem:[%s3686_s1 + $0x358] sm:$0xff]  ;;  %v1778_v41 = vpack.c.bf16 %v129_v32, %v126_v30  ;;  %v125_v43 = vld [vmem:[%s3686_s1 + $0x2d0] sm:$0xff]  ;;  %v128_v44 = vld [vmem:[%s3686_s1 + $0x2e8] sm:$0xff] }
  0x24   :  { %1999 = vmatprep.subr.bf16.mxu1 %v1998_v60  ;;  %v132_v45 = vld [vmem:[%s3686_s1 + $0x308] sm:$0xff]  ;;  %v2012_v46 = vpack.c.bf16 %v142_v36, %v139_v35  ;;  %v135_v47 = vld [vmem:[%s3686_s1 + $0x320] sm:$0xff]  ;;  %v145_v49 = vld [vmem:[%s3686_s1 + $0x370] sm:$0xff]  ;;  %v1780_v53 = vpack.c.bf16 %v128_v44, %v125_v43 }
  0x25   :  { %1753 = vmatpush1.bf16.msra.mxu0 %v1752_v23  ;;  %v2563_v23 = vrot.slane %v438_v8, %v2343_v42  ;;  %v148_v50 = vld [vmem:[%s3686_s1 + $0x388] sm:$0xff]  ;;  %v1782_v55 = vpack.c.bf16 %v135_v47, %v132_v45  ;;  %v131_v57 = vld [vmem:[%s3686_s1 + $0x300] sm:$0xff]  ;;  %v134_v58 = vld [vmem:[%s3686_s1 + $0x318] sm:$0xff] }
  0x26   :  { %1755 = vmatprep.subr.bf16.mxu0 %v1754_v26  ;;  %v1772_v26 = vpack.c.bf16 %v116_v16, %v113_v15  ;;  %v138_v59 = vld [vmem:[%s3686_s1 + $0x338] sm:$0xff]  ;;  %v2016_v60 = vpack.c.bf16 %v148_v50, %v145_v49  ;;  %v141_v61 = vld [vmem:[%s3686_s1 + $0x350] sm:$0xff]  ;;  %v151_v63 = vld [vmem:[%s3686_s1 + $0x3a0] sm:$0xff]  ;;  %v1784_v3 = vpack.c.bf16 %v134_v58, %v131_v57 }
  0x27   :  { %2001 = vmatpush3.bf16.msra.mxu1 %v2000_v6  ;;  %v454_v37 = vcombine.high %v2563_v23, %v2563_v23  ;;  %v154_v0 = vld [vmem:[%s3686_s1 + $0x3b8] sm:$0xff]  ;;  %v1786_v4 = vpack.c.bf16 %v141_v61, %v138_v59  ;;  %v137_v5 = vld [vmem:[%s3686_s1 + $0x330] sm:$0xff]  ;;  %v140_v6 = vld [vmem:[%s3686_s1 + $0x348] sm:$0xff] }
  0x28   :  { %2003 = vmatprep.subr.bf16.mxu1 %v2002_v9  ;;  %v144_v7 = vld [vmem:[%s3686_s1 + $0x368] sm:$0xff]  ;;  %v2020_v8 = vpack.c.bf16 %v154_v0, %v151_v63  ;;  %v147_v9 = vld [vmem:[%s3686_s1 + $0x380] sm:$0xff]  ;;  %v157_v11 = vld [vmem:[%s3686_s1 + $0x3d0] sm:$0xff] }
  0x29   :  { %1757 = vmatpush1.bf16.msra.mxu0 %v1756_v38  ;;  %v193_v38 = vld [vmem:[%s3686_s1 + $0x4f0] sm:$0xff]  ;;  %v160_v12 = vld [vmem:[%s3686_s1 + $0x3e8] sm:$0xff]  ;;  %v211_v13 = vld [vmem:[%s3686_s1 + $0x580] sm:$0xff]  ;;  %v1790_v15 = vpack.c.bf16 %v147_v9, %v144_v7 }
  0x2a   :  { %1759 = vmatprep.subr.bf16.mxu0 %v1758_v39  ;;  %v196_v39 = vld [vmem:[%s3686_s1 + $0x508] sm:$0xff]  ;;  %v143_v16 = vld [vmem:[%s3686_s1 + $0x360] sm:$0xff]  ;;  %v150_v17 = vld [vmem:[%s3686_s1 + $0x398] sm:$0xff] }
  0x2b   :  { %2005 = vmatpush3.bf16.msra.mxu1 %v2004_v18  ;;  %v2014_v48 = vpack.c.bf16 %v196_v39, %v193_v38  ;;  %v2024_v18 = vpack.c.bf16 %v160_v12, %v157_v11  ;;  %v153_v19 = vld [vmem:[%s3686_s1 + $0x3b0] sm:$0xff]  ;;  %v163_v21 = vld [vmem:[%s3686_s1 + $0x400] sm:$0xff]  ;;  %v166_v22 = vld [vmem:[%s3686_s1 + $0x418] sm:$0xff] }
  0x2c   :  { %2007 = vmatprep.subr.bf16.mxu1 %v2006_v20  ;;  %v217_v24 = vld [vmem:[%s3686_s1 + $0x5b0] sm:$0xff]  ;;  %v220_v25 = vld [vmem:[%s3686_s1 + $0x5c8] sm:$0xff]  ;;  %v159_v32 = vld [vmem:[%s3686_s1 + $0x3e0] sm:$0xff] }
  0x2d   :  { %1761 = vmatpush1.bf16.msra.mxu0 %v1760_v51  ;;  %v199_v51 = vld [vmem:[%s3686_s1 + $0x520] sm:$0xff]  ;;  %v149_v28 = vld [vmem:[%s3686_s1 + $0x390] sm:$0xff]  ;;  %v152_v29 = vld [vmem:[%s3686_s1 + $0x3a8] sm:$0xff] }
  0x2e   :  { %1763 = vmatprep.subr.bf16.mxu0 %v1762_v52  ;;  %829 = vmatmul.mubr.f32.vlgmr.msra.gmra.mrb[0].mxu1 %v2376_v56  ;;  %v202_v52 = vld [vmem:[%s3686_s1 + $0x538] sm:$0xff]  ;;  %v156_v30 = vld [vmem:[%s3686_s1 + $0x3c8] sm:$0xff]  ;;  %v169_v35 = vld [vmem:[%s3686_s1 + $0x430] sm:$0xff]  ;;  %v1796_v39 = vpack.c.bf16 %v152_v29, %v149_v28 }
  0x2f   :  { %2009 = vmatpush3.bf16.msra.mxu1 %v2008_v31  ;;  %898 = vmatprep.mubr.f32.mxu1 %v454_v37  ;;  %v2018_v62 = vpack.c.bf16 %v202_v52, %v199_v51  ;;  %v2028_v31 = vpack.c.bf16 %v166_v22, %v163_v21  ;;  %v172_v36 = vld [vmem:[%s3686_s1 + $0x448] sm:$0xff]  ;;  %v226_v38 = vld [vmem:[%s3686_s1 + $0x5f8] sm:$0xff]  ;;  %v277_v50 = vld [vmem:[%s3686_s1 + $0x790] sm:$0xff] }
  0x30   :  { %2011 = vmatprep.subr.bf16.mxu1 %v2010_v33  ;;  %v2030_v33 = vpack.c.bf16 %v220_v25, %v217_v24  ;;  %v158_v43 = vld [vmem:[%s3686_s1 + $0x3d8] sm:$0xff]  ;;  %v2032_v45 = vpack.c.bf16 %v172_v36, %v169_v35  ;;  %v280_v51 = vld [vmem:[%s3686_s1 + $0x7a8] sm:$0xff]  ;;  %v283_v0 = vld [vmem:[%s3686_s1 + $0x7c0] sm:$0xff] }
  0x31   :  { %1765 = vmatpush1.bf16.msra.mxu0 %v1764_v1  ;;  %v205_v1 = vld [vmem:[%s3686_s1 + $0x550] sm:$0xff]  ;;  %v162_v44 = vld [vmem:[%s3686_s1 + $0x3f8] sm:$0xff]  ;;  %v164_v57 = vld [vmem:[%s3686_s1 + $0x408] sm:$0xff]  ;;  %v2038_v61 = vpack.c.bf16 %v280_v51, %v277_v50 }
  0x32   :  { %1767 = vmatprep.subr.bf16.mxu0 %v1766_v2  ;;  %v208_v2 = vld [vmem:[%s3686_s1 + $0x568] sm:$0xff]  ;;  %v178_v49 = vld [vmem:[%s3686_s1 + $0x478] sm:$0xff]  ;;  %v177_v9 = vld [vmem:[%s3686_s1 + $0x470] sm:$0xff] }
  0x33   :  { %2013 = vmatpush3.bf16.msra.mxu1 %v2012_v46  ;;  %v2022_v10 = vpack.c.bf16 %v208_v2, %v205_v1  ;;  %v165_v46 = vld [vmem:[%s3686_s1 + $0x410] sm:$0xff]  ;;  %v168_v58 = vld [vmem:[%s3686_s1 + $0x428] sm:$0xff]  ;;  %v286_v1 = vld [vmem:[%s3686_s1 + $0x7d8] sm:$0xff] }
  0x34   :  { %2015 = vmatprep.subr.bf16.mxu1 %v2014_v48  ;;  %v175_v48 = vld [vmem:[%s3686_s1 + $0x460] sm:$0xff]  ;;  %v232_v63 = vld [vmem:[%s3686_s1 + $0x628] sm:$0xff]  ;;  %v238_v12 = vld [vmem:[%s3686_s1 + $0x658] sm:$0xff] }
  0x35   :  { %1769 = vmatpush1.bf16.msra.mxu0 %v1768_v54  ;;  %v214_v54 = vld [vmem:[%s3686_s1 + $0x598] sm:$0xff]  ;;  %v2036_v59 = vpack.c.bf16 %v178_v49, %v175_v48  ;;  %v235_v11 = vld [vmem:[%s3686_s1 + $0x640] sm:$0xff]  ;;  %v241_v24 = vld [vmem:[%s3686_s1 + $0x670] sm:$0xff] }
  0x36   :  { %1771 = vmatprep.subr.bf16.mxu0 %v1770_v14  ;;  %v1788_v14 = vpack.c.bf16 %v140_v6, %v137_v5  ;;  %v2026_v20 = vpack.c.bf16 %v214_v54, %v211_v13  ;;  %v170_v5 = vld [vmem:[%s3686_s1 + $0x438] sm:$0xff]  ;;  %v289_v54 = vld [vmem:[%s3686_s1 + $0x7f0] sm:$0xff]  ;;  %v183_v21 = vld [vmem:[%s3686_s1 + $0x4a0] sm:$0xff] }
  0x37   :  { %2017 = vmatpush3.bf16.msra.mxu1 %v2016_v60  ;;  %v171_v60 = vld [vmem:[%s3686_s1 + $0x440] sm:$0xff]  ;;  %v174_v6 = vld [vmem:[%s3686_s1 + $0x458] sm:$0xff]  ;;  %v244_v25 = vld [vmem:[%s3686_s1 + $0x688] sm:$0xff] }
  0x38   :  { %2019 = vmatprep.subr.bf16.mxu1 %v2018_v62  ;;  %v229_v62 = vld [vmem:[%s3686_s1 + $0x610] sm:$0xff]  ;;  %v195_v48 = vld [vmem:[%s3686_s1 + $0x500] sm:$0xff]  ;;  %v256_v51 = vld [vmem:[%s3686_s1 + $0x6e8] sm:$0xff] }
  0x39   :  { %1773 = vmatpush1.bf16.msra.mxu0 %v1772_v26  ;;  %v2040_v7 = vpack.c.bf16 %v232_v63, %v229_v62  ;;  %v189_v35 = vld [vmem:[%s3686_s1 + $0x4d0] sm:$0xff] }
  0x3a   :  { %1775 = vmatprep.subr.bf16.mxu0 %v1774_v27  ;;  %v1794_v27 = vpack.c.bf16 %v153_v19, %v150_v17  ;;  %v173_v17 = vld [vmem:[%s3686_s1 + $0x450] sm:$0xff]  ;;  %v180_v19 = vld [vmem:[%s3686_s1 + $0x488] sm:$0xff] }
  0x3b   :  { %2021 = vmatpush3.bf16.msra.mxu1 %v2020_v8  ;;  %v2779_v8 = vld [vmem:[%s3685_s0 + $0x8] sm:$0xff]  ;;  %v1814_v29 = vpack.c.bf16 %v183_v21, %v180_v19  ;;  %v253_v50 = vld [vmem:[%s3686_s1 + $0x6d0] sm:$0xff]  ;;  %v203_v19 = vld [vmem:[%s3686_s1 + $0x540] sm:$0xff] }
  0x3c   :  { %2023 = vmatprep.subr.bf16.mxu1 %v2022_v10  ;;  %v2042_v10 = vpack.c.bf16 %v286_v1, %v283_v0  ;;  %v2792_v13 = vrot.slane %v2779_v8, %v2343_v42  ;;  %v201_v62 = vld [vmem:[%s3686_s1 + $0x530] sm:$0xff]  ;;  %v259_v0 = vld [vmem:[%s3686_s1 + $0x700] sm:$0xff]  ;;  %v262_v1 = vld [vmem:[%s3686_s1 + $0x718] sm:$0xff] }
  0x3d   :  { %1777 = vmatpush1.bf16.msra.mxu0 %v1776_v40  ;;  %v1798_v40 = vpack.c.bf16 %v159_v32, %v156_v30  ;;  %v179_v30 = vld [vmem:[%s3686_s1 + $0x480] sm:$0xff]  ;;  %v186_v32 = vld [vmem:[%s3686_s1 + $0x4b8] sm:$0xff] }
  0x3e   :  { %1779 = vmatprep.subr.bf16.mxu0 %v1778_v41  ;;  %v155_v41 = vld [vmem:[%s3686_s1 + $0x3c0] sm:$0xff]  ;;  %v210_v21 = vld [vmem:[%s3686_s1 + $0x578] sm:$0xff] }
  0x3f   :  { %2025 = vmatpush3.bf16.msra.mxu1 %v2024_v18  ;;  %v1800_v52 = vpack.c.bf16 %v158_v43, %v155_v41  ;;  %v176_v18 = vld [vmem:[%s3686_s1 + $0x468] sm:$0xff]  ;;  %v1818_v43 = vpack.c.bf16 %v189_v35, %v186_v32 }
  0x40   :  { %2027 = vmatprep.subr.bf16.mxu1 %v2026_v20  ;;  %v2044_v20 = vpack.c.bf16 %v238_v12, %v235_v11  ;;  %v1812_v28 = vpack.c.bf16 %v176_v18, %v173_v17  ;;  %v207_v11 = vld [vmem:[%s3686_s1 + $0x560] sm:$0xff]  ;;  %v216_v35 = vld [vmem:[%s3686_s1 + $0x5a8] sm:$0xff] }
  0x41   :  { %1781 = vmatpush1.bf16.msra.mxu0 %v1780_v53  ;;  %v1802_v53 = vpack.c.bf16 %v165_v46, %v162_v44  ;;  %v185_v44 = vld [vmem:[%s3686_s1 + $0x4b0] sm:$0xff]  ;;  %v192_v46 = vld [vmem:[%s3686_s1 + $0x4e8] sm:$0xff] }
  0x42   :  { %1783 = vmatprep.subr.bf16.mxu0 %v1782_v55  ;;  %v161_v55 = vld [vmem:[%s3686_s1 + $0x3f0] sm:$0xff] }
  0x43   :  { %2029 = vmatpush3.bf16.msra.mxu1 %v2028_v31  ;;  %v1804_v2 = vpack.c.bf16 %v164_v57, %v161_v55  ;;  %v182_v31 = vld [vmem:[%s3686_s1 + $0x498] sm:$0xff]  ;;  %v1822_v57 = vpack.c.bf16 %v195_v48, %v192_v46 }
  0x44   :  { %545 = vmatmul.mubr.f32.vlgmr.msra.gmra.mrb[0].mxu0 %v2376_v56  ;;  %v146_v56 = vld [vmem:[%s3686_s1 + $0x378] sm:$0xff]  ;;  %2031 = vmatprep.subr.bf16.mxu1 %v2030_v33  ;;  %v2048_v33 = vpack.c.bf16 %v244_v25, %v241_v24  ;;  %v1816_v41 = vpack.c.bf16 %v182_v31, %v179_v30  ;;  %v213_v24 = vld [vmem:[%s3686_s1 + $0x590] sm:$0xff]  ;;  %v376_v30 = vld [vmem:[%s3686_s1 + $0xaa8] sm:$0xff] }
  0x45   :  { %1785 = vmatpush1.bf16.msra.mxu0 %v1784_v3  ;;  %615 = vmatprep.mubr.f32.mxu0 %v454_v37  ;;  %v1792_v26 = vpack.c.bf16 %v146_v56, %v143_v16  ;;  %v223_v37 = vld [vmem:[%s3686_s1 + $0x5e0] sm:$0xff]  ;;  %v2803_v16 = vcombine.high %v2792_v13, %v2792_v13  ;;  %v1810_v56 = vpack.c.bf16 %v177_v9, %v174_v6  ;;  %v197_v6 = vld [vmem:[%s3686_s1 + $0x510] sm:$0xff]  ;;  %v204_v9 = vld [vmem:[%s3686_s1 + $0x548] sm:$0xff] }
  0x46   :  { %1787 = vmatprep.subr.bf16.mxu0 %v1786_v4  ;;  %v2034_v47 = vpack.c.bf16 %v226_v38, %v223_v37  ;;  %v167_v3 = vld [vmem:[%s3686_s1 + $0x420] sm:$0xff]  ;;  %v1806_v4 = vpack.c.bf16 %v171_v60, %v168_v58  ;;  %v250_v38 = vld [vmem:[%s3686_s1 + $0x6b8] sm:$0xff]  ;;  %v1830_v18 = vpack.c.bf16 %v207_v11, %v204_v9  ;;  %v1834_v32 = vpack.c.bf16 %v213_v24, %v210_v21 }
  0x47   :  { %2033 = vmatpush3.bf16.msra.mxu1 %v2032_v45  ;;  %v247_v37 = vld [vmem:[%s3686_s1 + $0x6a0] sm:$0xff]  ;;  %v188_v45 = vld [vmem:[%s3686_s1 + $0x4c8] sm:$0xff]  ;;  %v198_v60 = vld [vmem:[%s3686_s1 + $0x518] sm:$0xff] }
  0x48   :  { %2035 = vmatprep.subr.bf16.mxu1 %v2034_v47  ;;  %v2052_v47 = vpack.c.bf16 %v250_v38, %v247_v37  ;;  %v1820_v55 = vpack.c.bf16 %v188_v45, %v185_v44  ;;  %v191_v58 = vld [vmem:[%s3686_s1 + $0x4e0] sm:$0xff]  ;;  %v382_v44 = vld [vmem:[%s3686_s1 + $0xad8] sm:$0xff] }
  0x49   :  { %1789 = vmatpush1.bf16.msra.mxu0 %v1788_v14  ;;  %v292_v14 = vld [vmem:[%s3686_s1 + $0x808] sm:$0xff]  ;;  %v219_v37 = vld [vmem:[%s3686_s1 + $0x5c0] sm:$0xff]  ;;  %v222_v48 = vld [vmem:[%s3686_s1 + $0x5d8] sm:$0xff] }
  0x4a   :  { %1791 = vmatprep.subr.bf16.mxu0 %v1790_v15  ;;  %v1808_v15 = vpack.c.bf16 %v170_v5, %v167_v3  ;;  %v2046_v22 = vpack.c.bf16 %v292_v14, %v289_v54  ;;  %v316_v3 = vld [vmem:[%s3686_s1 + $0x8c8] sm:$0xff]  ;;  %v1826_v5 = vpack.c.bf16 %v201_v62, %v198_v60  ;;  %v265_v54 = vld [vmem:[%s3686_s1 + $0x730] sm:$0xff]  ;;  %v1838_v46 = vpack.c.bf16 %v219_v37, %v216_v35  ;;  %v230_v11 = vld [vmem:[%s3686_s1 + $0x618] sm:$0xff] }
  0x4b   :  { %2037 = vmatpush3.bf16.msra.mxu1 %v2036_v59  ;;  %v194_v59 = vld [vmem:[%s3686_s1 + $0x4f8] sm:$0xff]  ;;  %v268_v14 = vld [vmem:[%s3686_s1 + $0x748] sm:$0xff] }
  0x4c   :  { %2039 = vmatprep.subr.bf16.mxu1 %v2038_v61  ;;  %v2056_v61 = vpack.c.bf16 %v256_v51, %v253_v50  ;;  %v225_v50 = vld [vmem:[%s3686_s1 + $0x5f0] sm:$0xff]  ;;  %v224_v62 = vld [vmem:[%s3686_s1 + $0x5e8] sm:$0xff] }
  0x4d   :  { %1793 = vmatpush1.bf16.msra.mxu0 %v1792_v26  ;;  %v295_v26 = vld [vmem:[%s3686_s1 + $0x820] sm:$0xff]  ;;  %v1842_v60 = vpack.c.bf16 %v225_v50, %v222_v48 }
  0x4e   :  { %1795 = vmatprep.subr.bf16.mxu0 %v1794_v27  ;;  %899 = vmatmul.mubr.f32.vlgmr.msra.gmra.mrb[2].mxu1 %v2563_v23  ;;  %v298_v27 = vld [vmem:[%s3686_s1 + $0x838] sm:$0xff] }
  0x4f   :  { %2041 = vmatpush3.bf16.msra.mxu1 %v2040_v7  ;;  %968 = vmatprep.mubr.f32.mxu1 %v2803_v16  ;;  %v2050_v36 = vpack.c.bf16 %v298_v27, %v295_v26  ;;  %v200_v7 = vld [vmem:[%s3686_s1 + $0x528] sm:$0xff]  ;;  %v271_v26 = vld [vmem:[%s3686_s1 + $0x760] sm:$0xff]  ;;  %v274_v27 = vld [vmem:[%s3686_s1 + $0x778] sm:$0xff] }
  0x50   :  { %2043 = vmatprep.subr.bf16.mxu1 %v2042_v10  ;;  %v2060_v10 = vpack.c.bf16 %v262_v1, %v259_v0  ;;  %v1828_v17 = vpack.c.bf16 %v200_v7, %v197_v6  ;;  %v231_v1 = vld [vmem:[%s3686_s1 + $0x620] sm:$0xff]  ;;  %v394_v6 = vld [vmem:[%s3686_s1 + $0xb38] sm:$0xff] }
  0x51   :  { %1797 = vmatpush1.bf16.msra.mxu0 %v1796_v39  ;;  %v301_v39 = vld [vmem:[%s3686_s1 + $0x850] sm:$0xff] }
  0x52   :  { %1799 = vmatprep.subr.bf16.mxu0 %v1798_v40  ;;  %v304_v40 = vld [vmem:[%s3686_s1 + $0x868] sm:$0xff] }
  0x53   :  { %2045 = vmatpush3.bf16.msra.mxu1 %v2044_v20  ;;  %v2054_v49 = vpack.c.bf16 %v304_v40, %v301_v39  ;;  %v206_v20 = vld [vmem:[%s3686_s1 + $0x558] sm:$0xff]  ;;  %v325_v39 = vld [vmem:[%s3686_s1 + $0x910] sm:$0xff]  ;;  %v328_v40 = vld [vmem:[%s3686_s1 + $0x928] sm:$0xff] }
  0x54   :  { %2047 = vmatprep.subr.bf16.mxu1 %v2046_v22  ;;  %v2064_v22 = vpack.c.bf16 %v268_v14, %v265_v54  ;;  %v1832_v31 = vpack.c.bf16 %v206_v20, %v203_v19  ;;  %v237_v14 = vld [vmem:[%s3686_s1 + $0x650] sm:$0xff]  ;;  %v400_v19 = vld [vmem:[%s3686_s1 + $0xb68] sm:$0xff] }
  0x55   :  { %1801 = vmatpush1.bf16.msra.mxu0 %v1800_v52  ;;  %v307_v52 = vld [vmem:[%s3686_s1 + $0x880] sm:$0xff] }
  0x56   :  { %1803 = vmatprep.subr.bf16.mxu0 %v1802_v53  ;;  %v310_v53 = vld [vmem:[%s3686_s1 + $0x898] sm:$0xff] }
  0x57   :  { %2049 = vmatpush3.bf16.msra.mxu1 %v2048_v33  ;;  %v2058_v63 = vpack.c.bf16 %v310_v53, %v307_v52  ;;  %v209_v33 = vld [vmem:[%s3686_s1 + $0x570] sm:$0xff]  ;;  %v331_v52 = vld [vmem:[%s3686_s1 + $0x940] sm:$0xff]  ;;  %v334_v53 = vld [vmem:[%s3686_s1 + $0x958] sm:$0xff] }
  0x58   :  { %2051 = vmatprep.subr.bf16.mxu1 %v2050_v36  ;;  %v2068_v36 = vpack.c.bf16 %v274_v27, %v271_v26  ;;  %v2076_v0 = vpack.c.bf16 %v334_v53, %v331_v52 }
  0x59   :  { %1805 = vmatpush1.bf16.msra.mxu0 %v1804_v2  ;;  %v313_v2 = vld [vmem:[%s3686_s1 + $0x8b0] sm:$0xff] }
  0x5a   :  { %1807 = vmatprep.subr.bf16.mxu0 %v1806_v4  ;;  %v1824_v4 = vpack.c.bf16 %v194_v59, %v191_v58  ;;  %v2062_v12 = vpack.c.bf16 %v316_v3, %v313_v2  ;;  %v388_v58 = vld [vmem:[%s3686_s1 + $0xb08] sm:$0xff]  ;;  %v337_v3 = vld [vmem:[%s3686_s1 + $0x970] sm:$0xff] }
  0x5b   :  { %2053 = vmatpush3.bf16.msra.mxu1 %v2052_v47  ;;  %v215_v47 = vld [vmem:[%s3686_s1 + $0x5a0] sm:$0xff] }
  0x5c   :  { %2055 = vmatprep.subr.bf16.mxu1 %v2054_v49  ;;  %v2072_v49 = vpack.c.bf16 %v328_v40, %v325_v39 }
  0x5d   :  { %1809 = vmatpush1.bf16.msra.mxu0 %v1808_v15  ;;  %v319_v15 = vld [vmem:[%s3686_s1 + $0x8e0] sm:$0xff] }
  0x5e   :  { %1811 = vmatprep.subr.bf16.mxu0 %v1810_v56  ;;  %v322_v56 = vld [vmem:[%s3686_s1 + $0x8f8] sm:$0xff] }
  0x5f   :  { %2057 = vmatpush3.bf16.msra.mxu1 %v2056_v61  ;;  %v2066_v25 = vpack.c.bf16 %v322_v56, %v319_v15  ;;  %v221_v61 = vld [vmem:[%s3686_s1 + $0x5d0] sm:$0xff]  ;;  %v343_v56 = vld [vmem:[%s3686_s1 + $0x9a0] sm:$0xff] }
  0x60   :  { %2059 = vmatprep.subr.bf16.mxu1 %v2058_v63  ;;  %v228_v63 = vld [vmem:[%s3686_s1 + $0x608] sm:$0xff]  ;;  %v1844_v7 = vpack.c.bf16 %v224_v62, %v221_v61 }
  0x61   :  { %1813 = vmatpush1.bf16.msra.mxu0 %v1812_v28  ;;  %v455_v28 = vcombine.high %v2779_v8, %v2779_v8  ;;  %v212_v8 = vld [vmem:[%s3686_s1 + $0x588] sm:$0xff]  ;;  %v1846_v9 = vpack.c.bf16 %v231_v1, %v228_v63 }
  0x62   :  { %1815 = vmatprep.subr.bf16.mxu0 %v1814_v29  ;;  %v373_v29 = vld [vmem:[%s3686_s1 + $0xa90] sm:$0xff]  ;;  %v1836_v45 = vpack.c.bf16 %v212_v8, %v209_v33 }
  0x63   :  { %2061 = vmatpush3.bf16.msra.mxu1 %v2060_v10  ;;  %v2070_v38 = vpack.c.bf16 %v376_v30, %v373_v29  ;;  %v227_v10 = vld [vmem:[%s3686_s1 + $0x600] sm:$0xff] }
  0x64   :  { %2063 = vmatprep.subr.bf16.mxu1 %v2062_v12  ;;  %v234_v12 = vld [vmem:[%s3686_s1 + $0x638] sm:$0xff]  ;;  %v1848_v20 = vpack.c.bf16 %v230_v11, %v227_v10 }
  0x65   :  { %1817 = vmatpush1.bf16.msra.mxu0 %v1816_v41  ;;  %v2971_v41 = vrot.slane %v455_v28, %v2343_v42  ;;  %v218_v42 = vld [vmem:[%s3686_s1 + $0x5b8] sm:$0xff] }
  0x66   :  { %1819 = vmatprep.subr.bf16.mxu0 %v1818_v43  ;;  %v379_v43 = vld [vmem:[%s3686_s1 + $0xac0] sm:$0xff]  ;;  %v1840_v59 = vpack.c.bf16 %v218_v42, %v215_v47 }
  0x67   :  { %2065 = vmatpush3.bf16.msra.mxu1 %v2064_v22  ;;  %v2074_v51 = vpack.c.bf16 %v382_v44, %v379_v43 }
  0x68   :  { %2067 = vmatprep.subr.bf16.mxu1 %v2066_v25 }
  0x69   :  { %1821 = vmatpush1.bf16.msra.mxu0 %v1820_v55  ;;  %v2999_v55 = vcombine.high %v2971_v41, %v2971_v41 }
  0x6a   :  { %1823 = vmatprep.subr.bf16.mxu0 %v1822_v57  ;;  %v385_v57 = vld [vmem:[%s3686_s1 + $0xaf0] sm:$0xff] }
  0x6b   :  { %2069 = vmatpush3.bf16.msra.mxu1 %v2068_v36  ;;  %v2078_v2 = vpack.c.bf16 %v388_v58, %v385_v57 }
  0x6c   :  { %2071 = vmatprep.subr.bf16.mxu1 %v2070_v38 }
  0x6d   :  { %1825 = vmatpush1.bf16.msra.mxu0 %v1824_v4  ;;  %v340_v4 = vld [vmem:[%s3686_s1 + $0x988] sm:$0xff] }
  0x6e   :  { %1827 = vmatprep.subr.bf16.mxu0 %v1826_v5  ;;  %969 = vmatmul.mubr.f32.vlgmr.msra.gmra.mrb[4].mxu1 %v2792_v13  ;;  %v391_v5 = vld [vmem:[%s3686_s1 + $0xb20] sm:$0xff]  ;;  %v2080_v54 = vpack.c.bf16 %v340_v4, %v337_v3 }
  0x6f   :  { %2073 = vmatpush3.bf16.msra.mxu1 %v2072_v49  ;;  %1038 = vmatprep.mubr.f32.mxu1 %v2999_v55  ;;  %v2082_v15 = vpack.c.bf16 %v394_v6, %v391_v5 }
  0x70   :  { %2075 = vmatprep.subr.bf16.mxu1 %v2074_v51 }
  0x71   :  { %1829 = vmatpush1.bf16.msra.mxu0 %v1828_v17  ;;  %v346_v17 = vld [vmem:[%s3686_s1 + $0x9b8] sm:$0xff] }
  0x72   :  { %1831 = vmatprep.subr.bf16.mxu0 %v1830_v18  ;;  %v397_v18 = vld [vmem:[%s3686_s1 + $0xb50] sm:$0xff] }
  0x73   :  { %2077 = vmatpush3.bf16.msra.mxu1 %v2076_v0 }
  0x74   :  { %2079 = vmatprep.subr.bf16.mxu1 %v2078_v2 }
  0x75   :  { %1833 = vmatpush1.bf16.msra.mxu0 %v1832_v31 }
  0x76   :  { %1835 = vmatprep.subr.bf16.mxu0 %v1834_v32 }
  0x79   :  { %1837 = vmatpush1.bf16.msra.mxu0 %v1836_v45 }
  0x7a   :  { %1839 = vmatprep.subr.bf16.mxu0 %v1838_v46 }
  0x7d   :  { %1841 = vmatpush1.bf16.msra.mxu0 %v1840_v59 }
  0x7e   :  { %1843 = vmatprep.subr.bf16.mxu0 %v1842_v60 }
  0x81   :  { %1845 = vmatpush1.bf16.msra.mxu0 %v1844_v7 }
  0x82   :  { %14 = vsyncpa [#allocation3], 0  ;;  %1847 = vmatprep.subr.bf16.mxu0 %v1846_v9  ;;  %v1850_v21 = vpack.c.bf16 %v237_v14, %v234_v12  ;;  %v233_v22 = vld [vmem:[%s3686_s1 + $0x630] sm:$0xff]  ;;  %v236_v24 = vld [vmem:[%s3686_s1 + $0x648] sm:$0xff]  ;;  %2081 = vmatpush3.bf16.msra.mxu1 %v2080_v54  ;;  %v2084_v26 = vpack.c.bf16 %v346_v17, %v343_v56  ;;  %v2086_v28 = vpack.c.bf16 %v400_v19, %v397_v18  ;;  %vm2209_vm0 = vmmov 0  }
  0x83   :  { %v240_v25 = vld [vmem:[%s3686_s1 + $0x668] sm:$0xff]  ;;  %v243_v27 = vld [vmem:[%s3686_s1 + $0x680] sm:$0xff]  ;;  %2083 = vmatprep.subr.bf16.mxu1 %v2082_v15  ;;  %v349_v29 = vld [vmem:[%s3686_s1 + $0x9d0] sm:$0xff]  ;;  %v1852_v33 = vpack.c.bf16 %v236_v24, %v233_v22  ;;  %vm1099_vm1 = vcmask 850944   ;;  %vm1258_vm2 = vcmask 1043456   ;;  %vm1254_vm3 = vcmask 162816  }
  0x84   :  { %v352_v30 = vld [vmem:[%s3686_s1 + $0x9e8] sm:$0xff]  ;;  %616 = vmatmul.mubr.f32.vlgmr.msra.gmra.mrb[0].mxu0 %v2563_v23  ;;  %v403_v31 = vld [vmem:[%s3686_s1 + $0xb80] sm:$0xff]  ;;  %v406_v32 = vld [vmem:[%s3686_s1 + $0xb98] sm:$0xff]  ;;  %v1854_v8 = vpack.c.bf16 %v243_v27, %v240_v25  ;;  %vm1351_vm4 = vcmask 1041408   ;;  %vm1347_vm5 = vcmask 408576   ;;  %vm1425_vm6 = vcmask 74752  }
  0x85   :  { %1849 = vmatpush1.bf16.msra.mxu0 %v1848_v20  ;;  %686 = vmatprep.mubr.f32.mxu0 %v2803_v16  ;;  %v239_v35 = vld [vmem:[%s3686_s1 + $0x660] sm:$0xff]  ;;  %v242_v23 = vld [vmem:[%s3686_s1 + $0x678] sm:$0xff]  ;;  %v2088_v37 = vpack.c.bf16 %v352_v30, %v349_v29  ;;  %v249_v16 = vld [vmem:[%s3686_s1 + $0x6b0] sm:$0xff]  ;;  %v2090_v38 = vpack.c.bf16 %v406_v32, %v403_v31 }
  0x86   :  { %1851 = vmatprep.subr.bf16.mxu0 %v1850_v21  ;;  %v246_v36 = vld [vmem:[%s3686_s1 + $0x698] sm:$0xff]  ;;  %2085 = vmatpush3.bf16.msra.mxu1 %v2084_v26  ;;  %v355_v39 = vld [vmem:[%s3686_s1 + $0xa00] sm:$0xff]  ;;  %v409_v43 = vld [vmem:[%s3686_s1 + $0xbb0] sm:$0xff]  ;;  %v1856_v45 = vpack.c.bf16 %v242_v23, %v239_v35 }
  0x87   :  { %2087 = vmatprep.subr.bf16.mxu1 %v2086_v28  ;;  %v358_v40 = vld [vmem:[%s3686_s1 + $0xa18] sm:$0xff]  ;;  %v412_v44 = vld [vmem:[%s3686_s1 + $0xbc8] sm:$0xff]  ;;  %v1858_v46 = vpack.c.bf16 %v249_v16, %v246_v36  ;;  %v245_v47 = vld [vmem:[%s3686_s1 + $0x690] sm:$0xff] }
  0x88   :  { %v248_v42 = vld [vmem:[%s3686_s1 + $0x6a8] sm:$0xff]  ;;  %v2092_v49 = vpack.c.bf16 %v358_v40, %v355_v39  ;;  %v255_v50 = vld [vmem:[%s3686_s1 + $0x6e0] sm:$0xff]  ;;  %v2094_v51 = vpack.c.bf16 %v412_v44, %v409_v43  ;;  %v361_v52 = vld [vmem:[%s3686_s1 + $0xa30] sm:$0xff] }
  0x89   :  { %1853 = vmatpush1.bf16.msra.mxu0 %v1852_v33  ;;  %v252_v48 = vld [vmem:[%s3686_s1 + $0x6c8] sm:$0xff]  ;;  %v415_v57 = vld [vmem:[%s3686_s1 + $0xbe0] sm:$0xff]  ;;  %v418_v58 = vld [vmem:[%s3686_s1 + $0xbf8] sm:$0xff]  ;;  %v1860_v59 = vpack.c.bf16 %v248_v42, %v245_v47 }
  0x8a   :  { %1855 = vmatprep.subr.bf16.mxu0 %v1854_v8  ;;  %2089 = vmatpush3.bf16.msra.mxu1 %v2088_v37  ;;  %v364_v53 = vld [vmem:[%s3686_s1 + $0xa48] sm:$0xff]  ;;  %v1862_v60 = vpack.c.bf16 %v255_v50, %v252_v48  ;;  %v251_v61 = vld [vmem:[%s3686_s1 + $0x6c0] sm:$0xff]  ;;  %v254_v62 = vld [vmem:[%s3686_s1 + $0x6d8] sm:$0xff]  ;;  %v2098_v2 = vpack.c.bf16 %v418_v58, %v415_v57 }
  0x8b   :  { %2091 = vmatprep.subr.bf16.mxu1 %v2090_v38  ;;  %v258_v63 = vld [vmem:[%s3686_s1 + $0x6f8] sm:$0xff]  ;;  %v2096_v0 = vpack.c.bf16 %v364_v53, %v361_v52  ;;  %v261_v1 = vld [vmem:[%s3686_s1 + $0x710] sm:$0xff]  ;;  %v367_v3 = vld [vmem:[%s3686_s1 + $0xa60] sm:$0xff]  ;;  %v1864_v5 = vpack.c.bf16 %v254_v62, %v251_v61 }
  0x8c   :  { %v370_v4 = vld [vmem:[%s3686_s1 + $0xa78] sm:$0xff]  ;;  %v1866_v6 = vpack.c.bf16 %v261_v1, %v258_v63  ;;  %v257_v7 = vld [vmem:[%s3686_s1 + $0x6f0] sm:$0xff]  ;;  %v260_v9 = vld [vmem:[%s3686_s1 + $0x708] sm:$0xff] }
  0x8d   :  { %1857 = vmatpush1.bf16.msra.mxu0 %v1856_v45  ;;  %v2100_v10 = vpack.c.bf16 %v370_v4, %v367_v3  ;;  %v264_v11 = vld [vmem:[%s3686_s1 + $0x728] sm:$0xff]  ;;  %v267_v12 = vld [vmem:[%s3686_s1 + $0x740] sm:$0xff]  ;;  %v1868_v54 = vpack.c.bf16 %v260_v9, %v257_v7  ;;  %v266_v56 = vld [vmem:[%s3686_s1 + $0x738] sm:$0xff] }
  0x8e   :  { %1859 = vmatprep.subr.bf16.mxu0 %v1858_v46  ;;  %2093 = vmatpush3.bf16.msra.mxu1 %v2092_v49  ;;  %v1870_v14 = vpack.c.bf16 %v267_v12, %v264_v11  ;;  %v263_v15 = vld [vmem:[%s3686_s1 + $0x720] sm:$0xff]  ;;  %v270_v17 = vld [vmem:[%s3686_s1 + $0x758] sm:$0xff]  ;;  %v273_v18 = vld [vmem:[%s3686_s1 + $0x770] sm:$0xff] }
  0x8f   :  { %2095 = vmatprep.subr.bf16.mxu1 %v2094_v51  ;;  %v1872_v19 = vpack.c.bf16 %v266_v56, %v263_v15  ;;  %v1874_v20 = vpack.c.bf16 %v273_v18, %v270_v17  ;;  %v269_v21 = vld [vmem:[%s3686_s1 + $0x750] sm:$0xff]  ;;  %v272_v22 = vld [vmem:[%s3686_s1 + $0x768] sm:$0xff]  ;;  %v279_v25 = vld [vmem:[%s3686_s1 + $0x7a0] sm:$0xff] }
  0x90   :  { %v276_v24 = vld [vmem:[%s3686_s1 + $0x788] sm:$0xff]  ;;  %v1876_v26 = vpack.c.bf16 %v272_v22, %v269_v21  ;;  %v275_v28 = vld [vmem:[%s3686_s1 + $0x780] sm:$0xff]  ;;  %v278_v29 = vld [vmem:[%s3686_s1 + $0x798] sm:$0xff] }
  0x91   :  { %1861 = vmatpush1.bf16.msra.mxu0 %v1860_v59  ;;  %v1878_v27 = vpack.c.bf16 %v279_v25, %v276_v24  ;;  %v282_v30 = vld [vmem:[%s3686_s1 + $0x7b8] sm:$0xff]  ;;  %v285_v31 = vld [vmem:[%s3686_s1 + $0x7d0] sm:$0xff]  ;;  %v1880_v32 = vpack.c.bf16 %v278_v29, %v275_v28  ;;  %v284_v35 = vld [vmem:[%s3686_s1 + $0x7c8] sm:$0xff] }
  0x92   :  { %1863 = vmatprep.subr.bf16.mxu0 %v1862_v60  ;;  %2097 = vmatpush3.bf16.msra.mxu1 %v2096_v0  ;;  %v1882_v33 = vpack.c.bf16 %v285_v31, %v282_v30  ;;  %v281_v8 = vld [vmem:[%s3686_s1 + $0x7b0] sm:$0xff]  ;;  %v288_v23 = vld [vmem:[%s3686_s1 + $0x7e8] sm:$0xff]  ;;  %v291_v36 = vld [vmem:[%s3686_s1 + $0x800] sm:$0xff] }
  0x93   :  { %2099 = vmatprep.subr.bf16.mxu1 %v2098_v2  ;;  %v1884_v37 = vpack.c.bf16 %v284_v35, %v281_v8  ;;  %v1886_v16 = vpack.c.bf16 %v291_v36, %v288_v23  ;;  %v287_v38 = vld [vmem:[%s3686_s1 + $0x7e0] sm:$0xff]  ;;  %v290_v39 = vld [vmem:[%s3686_s1 + $0x7f8] sm:$0xff]  ;;  %v297_v43 = vld [vmem:[%s3686_s1 + $0x830] sm:$0xff] }
  0x94   :  { %v294_v40 = vld [vmem:[%s3686_s1 + $0x818] sm:$0xff]  ;;  %v1888_v44 = vpack.c.bf16 %v290_v39, %v287_v38  ;;  %v293_v46 = vld [vmem:[%s3686_s1 + $0x810] sm:$0xff]  ;;  %v296_v47 = vld [vmem:[%s3686_s1 + $0x828] sm:$0xff] }
  0x95   :  { %1865 = vmatpush1.bf16.msra.mxu0 %v1864_v5  ;;  %v1890_v45 = vpack.c.bf16 %v297_v43, %v294_v40  ;;  %v300_v42 = vld [vmem:[%s3686_s1 + $0x848] sm:$0xff]  ;;  %v303_v48 = vld [vmem:[%s3686_s1 + $0x860] sm:$0xff]  ;;  %v1892_v49 = vpack.c.bf16 %v296_v47, %v293_v46  ;;  %v302_v52 = vld [vmem:[%s3686_s1 + $0x858] sm:$0xff] }
  0x96   :  { %1867 = vmatprep.subr.bf16.mxu0 %v1866_v6  ;;  %2101 = vmatpush3.bf16.msra.mxu1 %v2100_v10  ;;  %v1894_v50 = vpack.c.bf16 %v303_v48, %v300_v42  ;;  %v299_v51 = vld [vmem:[%s3686_s1 + $0x840] sm:$0xff]  ;;  %v306_v53 = vld [vmem:[%s3686_s1 + $0x878] sm:$0xff]  ;;  %v309_v57 = vld [vmem:[%s3686_s1 + $0x890] sm:$0xff] }
  0x97   :  { %v1896_v58 = vpack.c.bf16 %v302_v52, %v299_v51  ;;  %v1898_v59 = vpack.c.bf16 %v309_v57, %v306_v53  ;;  %v305_v60 = vld [vmem:[%s3686_s1 + $0x870] sm:$0xff]  ;;  %v308_v61 = vld [vmem:[%s3686_s1 + $0x888] sm:$0xff]  ;;  %v315_v63 = vld [vmem:[%s3686_s1 + $0x8c0] sm:$0xff] }
  0x98   :  { %v312_v62 = vld [vmem:[%s3686_s1 + $0x8a8] sm:$0xff]  ;;  %v1900_v0 = vpack.c.bf16 %v308_v61, %v305_v60  ;;  %v311_v2 = vld [vmem:[%s3686_s1 + $0x8a0] sm:$0xff]  ;;  %v314_v3 = vld [vmem:[%s3686_s1 + $0x8b8] sm:$0xff] }
  0x99   :  { %1869 = vmatpush1.bf16.msra.mxu0 %v1868_v54  ;;  %1039 = vmatmul.mubr.f32.vlgmr.msra.gmra.mrb[6].mxu1 %v2971_v41  ;;  %v1902_v1 = vpack.c.bf16 %v315_v63, %v312_v62  ;;  %v318_v4 = vld [vmem:[%s3686_s1 + $0x8d8] sm:$0xff]  ;;  %v321_v5 = vld [vmem:[%s3686_s1 + $0x8f0] sm:$0xff]  ;;  %v1904_v6 = vpack.c.bf16 %v314_v3, %v311_v2  ;;  %v320_v10 = vld [vmem:[%s3686_s1 + $0x8e8] sm:$0xff] }
  0x9a   :  { %1871 = vmatprep.subr.bf16.mxu0 %v1870_v14  ;;  %v1906_v7 = vpack.c.bf16 %v321_v5, %v318_v4  ;;  %v317_v9 = vld [vmem:[%s3686_s1 + $0x8d0] sm:$0xff]  ;;  %v324_v11 = vld [vmem:[%s3686_s1 + $0x908] sm:$0xff]  ;;  %v327_v12 = vld [vmem:[%s3686_s1 + $0x920] sm:$0xff] }
  0x9b   :  { %v1908_v54 = vpack.c.bf16 %v320_v10, %v317_v9  ;;  %v1910_v14 = vpack.c.bf16 %v327_v12, %v324_v11  ;;  %v323_v15 = vld [vmem:[%s3686_s1 + $0x900] sm:$0xff]  ;;  %v326_v56 = vld [vmem:[%s3686_s1 + $0x918] sm:$0xff]  ;;  %v333_v18 = vld [vmem:[%s3686_s1 + $0x950] sm:$0xff] }
  0x9c   :  { %v330_v17 = vld [vmem:[%s3686_s1 + $0x938] sm:$0xff]  ;;  %v329_v21 = vld [vmem:[%s3686_s1 + $0x930] sm:$0xff]  ;;  %v332_v22 = vld [vmem:[%s3686_s1 + $0x948] sm:$0xff] }
  0x9d   :  { %1873 = vmatpush1.bf16.msra.mxu0 %v1872_v19  ;;  %v1912_v19 = vpack.c.bf16 %v326_v56, %v323_v15  ;;  %v336_v24 = vld [vmem:[%s3686_s1 + $0x968] sm:$0xff]  ;;  %v339_v25 = vld [vmem:[%s3686_s1 + $0x980] sm:$0xff]  ;;  %v338_v29 = vld [vmem:[%s3686_s1 + $0x978] sm:$0xff] }
  0x9e   :  { %1875 = vmatprep.subr.bf16.mxu0 %v1874_v20  ;;  %v1914_v20 = vpack.c.bf16 %v333_v18, %v330_v17  ;;  %v335_v28 = vld [vmem:[%s3686_s1 + $0x960] sm:$0xff]  ;;  %v342_v30 = vld [vmem:[%s3686_s1 + $0x998] sm:$0xff]  ;;  %v348_v8 = vld [vmem:[%s3686_s1 + $0x9c8] sm:$0xff] }
  0x9f   :  { %v351_v35 = vld [vmem:[%s3686_s1 + $0x9e0] sm:$0xff]  ;;  %v354_v38 = vld [vmem:[%s3686_s1 + $0x9f8] sm:$0xff]  ;;  %v357_v39 = vld [vmem:[%s3686_s1 + $0xa10] sm:$0xff] }
  0xa0   :  { %v1926_v36 = vpack.c.bf16 %v351_v35, %v348_v8  ;;  %v1930_v43 = vpack.c.bf16 %v357_v39, %v354_v38  ;;  %v360_v46 = vld [vmem:[%s3686_s1 + $0xa28] sm:$0xff]  ;;  %v363_v47 = vld [vmem:[%s3686_s1 + $0xa40] sm:$0xff]  ;;  %v366_v51 = vld [vmem:[%s3686_s1 + $0xa58] sm:$0xff] }
  0xa1   :  { %1877 = vmatpush1.bf16.msra.mxu0 %v1876_v26  ;;  %v1916_v26 = vpack.c.bf16 %v332_v22, %v329_v21  ;;  %v1934_v48 = vpack.c.bf16 %v363_v47, %v360_v46  ;;  %v369_v52 = vld [vmem:[%s3686_s1 + $0xa70] sm:$0xff]  ;;  %v372_v60 = vld [vmem:[%s3686_s1 + $0xa88] sm:$0xff]  ;;  %v375_v61 = vld [vmem:[%s3686_s1 + $0xaa0] sm:$0xff] }
  0xa2   :  { %1879 = vmatprep.subr.bf16.mxu0 %v1878_v27  ;;  %v1918_v27 = vpack.c.bf16 %v339_v25, %v336_v24  ;;  %v1938_v57 = vpack.c.bf16 %v369_v52, %v366_v51  ;;  %v1942_v63 = vpack.c.bf16 %v375_v61, %v372_v60  ;;  %v378_v2 = vld [vmem:[%s3686_s1 + $0xab8] sm:$0xff]  ;;  %v381_v3 = vld [vmem:[%s3686_s1 + $0xad0] sm:$0xff]  ;;  %v384_v9 = vld [vmem:[%s3686_s1 + $0xae8] sm:$0xff] }
  0xa3   :  { %v1946_v5 = vpack.c.bf16 %v381_v3, %v378_v2  ;;  %v387_v10 = vld [vmem:[%s3686_s1 + $0xb00] sm:$0xff]  ;;  %v390_v15 = vld [vmem:[%s3686_s1 + $0xb18] sm:$0xff]  ;;  %v393_v56 = vld [vmem:[%s3686_s1 + $0xb30] sm:$0xff] }
  0xa4   :  { %v1950_v12 = vpack.c.bf16 %v387_v10, %v384_v9  ;;  %v1954_v18 = vpack.c.bf16 %v393_v56, %v390_v15  ;;  %v396_v21 = vld [vmem:[%s3686_s1 + $0xb48] sm:$0xff]  ;;  %v399_v22 = vld [vmem:[%s3686_s1 + $0xb60] sm:$0xff]  ;;  %v1066_v38 = vld [vmem:[%s3688_s3 + $0x98] sm:$0xff] }
  0xa5   :  { %1881 = vmatpush1.bf16.msra.mxu0 %v1880_v32  ;;  %v341_v32 = vld [vmem:[%s3686_s1 + $0x990] sm:$0xff]  ;;  %v1958_v25 = vpack.c.bf16 %v399_v22, %v396_v21  ;;  %v1063_v8 = vld [vmem:[%s3688_s3 + $0x80] sm:$0xff]  ;;  %v1064_v35 = vld [vmem:[%s3688_s3 + $0x88] sm:$0xff] }
  0xa6   :  { %1883 = vmatprep.subr.bf16.mxu0 %v1882_v33  ;;  %v344_v33 = vld [vmem:[%s3686_s1 + $0x9a8] sm:$0xff]  ;;  %v417_v52 = vld [vmem:[%s3686_s1 + $0xbf0] sm:$0xff]  ;;  %v1070_v60 = vld [vmem:[%s3688_s3 + $0xb8] sm:$0xff] }
  0xa7   :  { %v1924_v23 = vpack.c.bf16 %v344_v33, %v341_v32  ;;  %v411_v32 = vld [vmem:[%s3686_s1 + $0xbc0] sm:$0xff]  ;;  %v1068_v47 = vld [vmem:[%s3688_s3 + $0xa8] sm:$0xff]  ;;  %v1053_v3 = vld [vmem:[%s3688_s3 + $0x30] sm:$0xff] }
  0xa9   :  { %1885 = vmatpush1.bf16.msra.mxu0 %v1884_v37  ;;  %v347_v37 = vld [vmem:[%s3686_s1 + $0x9c0] sm:$0xff] }
  0xaa   :  { %1887 = vmatprep.subr.bf16.mxu0 %v1886_v16  ;;  %v350_v16 = vld [vmem:[%s3686_s1 + $0x9d8] sm:$0xff] }
  0xab   :  { %v1928_v40 = vpack.c.bf16 %v350_v16, %v347_v37  ;;  %v1048_v37 = vld [vmem:[%s3688_s3 + $0x8] sm:$0xff]  ;;  %v1065_v16 = vld [vmem:[%s3688_s3 + $0x90] sm:$0xff] }
  0xad   :  { %1889 = vmatpush1.bf16.msra.mxu0 %v1888_v44  ;;  %v353_v44 = vld [vmem:[%s3686_s1 + $0x9f0] sm:$0xff] }
  0xae   :  { %1891 = vmatprep.subr.bf16.mxu0 %v1890_v45  ;;  %v356_v45 = vld [vmem:[%s3686_s1 + $0xa08] sm:$0xff] }
  0xaf   :  { %v1932_v42 = vpack.c.bf16 %v356_v45, %v353_v44  ;;  %v1050_v44 = vld [vmem:[%s3688_s3 + $0x18] sm:$0xff]  ;;  %v1067_v45 = vld [vmem:[%s3688_s3 + $0xa0] sm:$0xff] }
  0xb1   :  { %1893 = vmatpush1.bf16.msra.mxu0 %v1892_v49  ;;  %v359_v49 = vld [vmem:[%s3686_s1 + $0xa20] sm:$0xff] }
  0xb2   :  { %1895 = vmatprep.subr.bf16.mxu0 %v1894_v50  ;;  %v362_v50 = vld [vmem:[%s3686_s1 + $0xa38] sm:$0xff] }
  0xb3   :  { %v1936_v53 = vpack.c.bf16 %v362_v50, %v359_v49  ;;  %v410_v49 = vld [vmem:[%s3686_s1 + $0xbb8] sm:$0xff] }
  0xb4   :  { %v414_v50 = vld [vmem:[%s3686_s1 + $0xbd8] sm:$0xff] }
  0xb5   :  { %1897 = vmatpush1.bf16.msra.mxu0 %v1896_v58  ;;  %v365_v58 = vld [vmem:[%s3686_s1 + $0xa50] sm:$0xff] }
  0xb6   :  { %1899 = vmatprep.subr.bf16.mxu0 %v1898_v59  ;;  %v368_v59 = vld [vmem:[%s3686_s1 + $0xa68] sm:$0xff] }
  0xb7   :  { %v1940_v62 = vpack.c.bf16 %v368_v59, %v365_v58  ;;  %v1052_v58 = vld [vmem:[%s3688_s3 + $0x28] sm:$0xff]  ;;  %v1069_v59 = vld [vmem:[%s3688_s3 + $0xb0] sm:$0xff] }
  0xb8   :  { %v2114_v2 = vpack.c.bf16 %v1070_v60, %v1069_v59  ;;  %v1079_v59 = vld [vmem:[%s3688_s3 + $0x100] sm:$0xff]  ;;  %v1080_v60 = vld [vmem:[%s3688_s3 + $0x108] sm:$0xff] }
  0xb9   :  { %1901 = vmatpush1.bf16.msra.mxu0 %v1900_v0  ;;  %v371_v0 = vld [vmem:[%s3686_s1 + $0xa80] sm:$0xff] }
  0xba   :  { %1903 = vmatprep.subr.bf16.mxu0 %v1902_v1  ;;  %v374_v1 = vld [vmem:[%s3686_s1 + $0xa98] sm:$0xff] }
  0xbb   :  { %v1944_v4 = vpack.c.bf16 %v374_v1, %v371_v0  ;;  %v416_v0 = vld [vmem:[%s3686_s1 + $0xbe8] sm:$0xff] }
  0xbd   :  { %1905 = vmatpush1.bf16.msra.mxu0 %v1904_v6  ;;  %v377_v6 = vld [vmem:[%s3686_s1 + $0xab0] sm:$0xff] }
  0xbe   :  { %1907 = vmatprep.subr.bf16.mxu0 %v1906_v7  ;;  %v380_v7 = vld [vmem:[%s3686_s1 + $0xac8] sm:$0xff] }
  0xbf   :  { %v1948_v11 = vpack.c.bf16 %v380_v7, %v377_v6  ;;  %v1072_v6 = vld [vmem:[%s3688_s3 + $0xc8] sm:$0xff] }
  0xc1   :  { %1909 = vmatpush1.bf16.msra.mxu0 %v1908_v54  ;;  %v383_v54 = vld [vmem:[%s3686_s1 + $0xae0] sm:$0xff] }
  0xc2   :  { %1911 = vmatprep.subr.bf16.mxu0 %v1910_v14  ;;  %v386_v14 = vld [vmem:[%s3686_s1 + $0xaf8] sm:$0xff] }
  0xc3   :  { %v1952_v17 = vpack.c.bf16 %v386_v14, %v383_v54  ;;  %v1073_v54 = vld [vmem:[%s3688_s3 + $0xd0] sm:$0xff]  ;;  %v1074_v14 = vld [vmem:[%s3688_s3 + $0xd8] sm:$0xff] }
  0xc4   :  { %687 = vmatmul.mubr.f32.vlgmr.msra.gmra.mrb[0].mxu0 %v2792_v13  ;;  %v345_v13 = vld [vmem:[%s3686_s1 + $0x9b0] sm:$0xff]  ;;  %v2122_v56 = vpack.c.bf16 %v1074_v14, %v1073_v54 }
  0xc5   :  { %1913 = vmatpush1.bf16.msra.mxu0 %v1912_v19  ;;  %757 = vmatprep.mubr.f32.mxu0 %v2999_v55  ;;  %v1920_v55 = vpack.c.bf16 %v338_v29, %v335_v28  ;;  %v1922_v31 = vpack.c.bf16 %v345_v13, %v342_v30  ;;  %v389_v19 = vld [vmem:[%s3686_s1 + $0xb10] sm:$0xff]  ;;  %v402_v28 = vld [vmem:[%s3686_s1 + $0xb78] sm:$0xff] }
  0xc6   :  { %1915 = vmatprep.subr.bf16.mxu0 %v1914_v20  ;;  %v392_v20 = vld [vmem:[%s3686_s1 + $0xb28] sm:$0xff]  ;;  %v405_v29 = vld [vmem:[%s3686_s1 + $0xb90] sm:$0xff] }
  0xc7   :  { %v1956_v24 = vpack.c.bf16 %v392_v20, %v389_v19  ;;  %v401_v30 = vld [vmem:[%s3686_s1 + $0xb70] sm:$0xff]  ;;  %v1962_v33 = vpack.c.bf16 %v405_v29, %v402_v28  ;;  %v1075_v19 = vld [vmem:[%s3688_s3 + $0xe0] sm:$0xff]  ;;  %v1076_v20 = vld [vmem:[%s3688_s3 + $0xe8] sm:$0xff]  ;;  %v431_v29 = vsub.s32 2, %v2328_v34 }
  0xc8   :  { %v2126_v22 = vpack.c.bf16 %v1076_v20, %v1075_v19  ;;  %v1089_v14 = vld [vmem:[%s3688_s3 + $0x150] sm:$0xff]  ;;  %v1244_v19 = vld [vmem:[%s3690_s5] sm:$0xff]  ;;  %v1245_v20 = vld [vmem:[%s3690_s5 + $0x8] sm:$0xff] }
  0xc9   :  { %1917 = vmatpush1.bf16.msra.mxu0 %v1916_v26  ;;  %v395_v26 = vld [vmem:[%s3686_s1 + $0xb40] sm:$0xff] }
  0xca   :  { %1919 = vmatprep.subr.bf16.mxu0 %v1918_v27  ;;  %v398_v27 = vld [vmem:[%s3686_s1 + $0xb58] sm:$0xff] }
  0xcb   :  { %v1960_v13 = vpack.c.bf16 %v398_v27, %v395_v26 }
  0xcd   :  { %1921 = vmatpush1.bf16.msra.mxu0 %v1920_v55  ;;  %v404_v55 = vld [vmem:[%s3686_s1 + $0xb88] sm:$0xff] }
  0xce   :  { %1923 = vmatprep.subr.bf16.mxu0 %v1922_v31  ;;  %v408_v31 = vld [vmem:[%s3686_s1 + $0xba8] sm:$0xff]  ;;  %v1964_v46 = vpack.c.bf16 %v404_v55, %v401_v30  ;;  %v419_v30 = vld [vmem:[%s3687_s2] sm:$0x7] }
  0xd1   :  { %1925 = vmatpush1.bf16.msra.mxu0 %v1924_v23  ;;  %v1047_v23 = vld [vmem:[%s3688_s3] sm:$0xff] }
  0xd2   :  { %1927 = vmatprep.subr.bf16.mxu0 %v1926_v36  ;;  %v2102_v36 = vpack.c.bf16 %v1064_v35, %v1063_v8  ;;  %v2104_v39 = vpack.c.bf16 %v1048_v37, %v1047_v23 }
  0xd4   :  { %2103 = vmatprep.subr.bf16.mxu1 %v2102_v36 }
  0xd5   :  { %1929 = vmatpush1.bf16.msra.mxu0 %v1928_v40  ;;  %v2106_v40 = vpack.c.bf16 %v1066_v38, %v1065_v16  ;;  %2105 = vmatpush3.bf16.msra.mxu1 %v2104_v39  ;;  %v1077_v16 = vld [vmem:[%s3688_s3 + $0xf0] sm:$0xff]  ;;  %v1078_v38 = vld [vmem:[%s3688_s3 + $0xf8] sm:$0xff] }
  0xd6   :  { %1931 = vmatprep.subr.bf16.mxu0 %v1930_v43  ;;  %v1049_v43 = vld [vmem:[%s3688_s3 + $0x10] sm:$0xff]  ;;  %v2130_v39 = vpack.c.bf16 %v1078_v38, %v1077_v16  ;;  %v1456_v38 = vld [vmem:[%s3691_s6] ss:$0 sm:$0xff]  ;;  %s2211_s6 = smov [#allocation2]  }
  0xd7   :  { %v2108_v51 = vpack.c.bf16 %v1050_v44, %v1049_v43  ;;  %2107 = vmatprep.subr.bf16.mxu1 %v2106_v40  ;;  %v1061_v40 = vld [vmem:[%s3688_s3 + $0x70] sm:$0xff]  ;;  %v1062_v43 = vld [vmem:[%s3688_s3 + $0x78] sm:$0xff] }
  0xd8   :  { %v2132_v44 = vpack.c.bf16 %v1062_v43, %v1061_v40  ;;  %v1339_v16 = vld [vmem:[%s3692_s7 + $0x30] sm:$0x3] }
  0xd9   :  { %1933 = vmatpush1.bf16.msra.mxu0 %v1932_v42  ;;  %v1966_v42 = vpack.c.bf16 %v411_v32, %v408_v31  ;;  %2109 = vmatpush3.bf16.msra.mxu1 %v2108_v51 }
  0xda   :  { %1935 = vmatprep.subr.bf16.mxu0 %v1934_v48  ;;  %v407_v48 = vld [vmem:[%s3686_s1 + $0xba0] sm:$0xff] }
  0xdb   :  { %v1968_v61 = vpack.c.bf16 %v410_v49, %v407_v48  ;;  %v423_v49 = vsub.s32 0, %v2328_v34 }
  0xdd   :  { %1937 = vmatpush1.bf16.msra.mxu0 %v1936_v53  ;;  %v2110_v53 = vpack.c.bf16 %v1068_v47, %v1067_v45  ;;  %v2208_v45 = vmov 0.0|0.0   ;;  %v424_v51 = vrot.slane %v419_v30, %v423_v49 }
  0xde   :  { %1939 = vmatprep.subr.bf16.mxu0 %v1938_v57  ;;  %v1051_v57 = vld [vmem:[%s3688_s3 + $0x20] sm:$0xff] }
  0xdf   :  { %v2112_v1 = vpack.c.bf16 %v1052_v58, %v1051_v57  ;;  %2111 = vmatprep.subr.bf16.mxu1 %v2110_v53 }
  0xe1   :  { %1941 = vmatpush1.bf16.msra.mxu0 %v1940_v62  ;;  %v1970_v62 = vpack.c.bf16 %v417_v52, %v414_v50  ;;  %2113 = vmatpush3.bf16.msra.mxu1 %v2112_v1  ;;  %v427_v50 = vsub.s32 1, %v2328_v34  ;;  %v1081_v34 = vld [vmem:[%s3688_s3 + $0x110] sm:$0xff]  ;;  %v1082_v1 = vld [vmem:[%s3688_s3 + $0x118] sm:$0xff] }
  0xe2   :  { %1943 = vmatprep.subr.bf16.mxu0 %v1942_v63  ;;  %v413_v63 = vld [vmem:[%s3686_s1 + $0xbd0] sm:$0xff]  ;;  %2115 = vmatprep.subr.bf16.mxu1 %v2114_v2  ;;  %v2138_v2 = vpack.c.bf16 %v1082_v1, %v1081_v34 }
  0xe3   :  { %v1972_v7 = vpack.c.bf16 %v416_v0, %v413_v63  ;;  %v428_v52 = vrot.slane %v419_v30, %v427_v50  ;;  %v2135_v63 = vpack.c.bf16 %v1080_v60, %v1079_v59 }
  0xe5   :  { %1945 = vmatpush1.bf16.msra.mxu0 %v1944_v4  ;;  %v1054_v4 = vld [vmem:[%s3688_s3 + $0x38] sm:$0xff] }
  0xe6   :  { %1947 = vmatprep.subr.bf16.mxu0 %v1946_v5  ;;  %v1071_v5 = vld [vmem:[%s3688_s3 + $0xc0] sm:$0xff]  ;;  %v2116_v9 = vpack.c.bf16 %v1054_v4, %v1053_v3  ;;  %v2210_v3 = vmov 0.0  }
  0xe7   :  { %v2118_v10 = vpack.c.bf16 %v1072_v6, %v1071_v5  ;;  %v1083_v4 = vld [vmem:[%s3688_s3 + $0x120] sm:$0xff]  ;;  %v1084_v5 = vld [vmem:[%s3688_s3 + $0x128] sm:$0xff] }
  0xe8   :  { %2117 = vmatpush3.bf16.msra.mxu1 %v2116_v9  ;;  %v2141_v6 = vpack.c.bf16 %v1084_v5, %v1083_v4  ;;  %v1086_v9 = vld [vmem:[%s3688_s3 + $0x138] sm:$0xff] }
  0xe9   :  { %1949 = vmatpush1.bf16.msra.mxu0 %v1948_v11  ;;  %v1055_v11 = vld [vmem:[%s3688_s3 + $0x40] sm:$0xff]  ;;  %2119 = vmatprep.subr.bf16.mxu1 %v2118_v10 }
  0xea   :  { %1951 = vmatprep.subr.bf16.mxu0 %v1950_v12  ;;  %v1056_v12 = vld [vmem:[%s3688_s3 + $0x48] sm:$0xff] }
  0xeb   :  { %v2120_v15 = vpack.c.bf16 %v1056_v12, %v1055_v11  ;;  %v1087_v11 = vld [vmem:[%s3688_s3 + $0x140] sm:$0xff]  ;;  %v1088_v12 = vld [vmem:[%s3688_s3 + $0x148] sm:$0xff] }
  0xec   :  { %v2147_v54 = vpack.c.bf16 %v1088_v12, %v1087_v11 }
  0xed   :  { %1953 = vmatpush1.bf16.msra.mxu0 %v1952_v17  ;;  %v1057_v17 = vld [vmem:[%s3688_s3 + $0x50] sm:$0xff]  ;;  %2121 = vmatpush3.bf16.msra.mxu1 %v2120_v15  ;;  %v1090_v15 = vld [vmem:[%s3688_s3 + $0x158] sm:$0xff] }
  0xee   :  { %1955 = vmatprep.subr.bf16.mxu0 %v1954_v18  ;;  %v1058_v18 = vld [vmem:[%s3688_s3 + $0x58] sm:$0xff]  ;;  %2123 = vmatprep.subr.bf16.mxu1 %v2122_v56  ;;  %v2150_v56 = vpack.c.bf16 %v1090_v15, %v1089_v14 }
  0xef   :  { %v2124_v21 = vpack.c.bf16 %v1058_v18, %v1057_v17  ;;  %v1091_v17 = vld [vmem:[%s3688_s3 + $0x160] sm:$0xff] }
  0xf1   :  { %1957 = vmatpush1.bf16.msra.mxu0 %v1956_v24  ;;  %v1059_v24 = vld [vmem:[%s3688_s3 + $0x60] sm:$0xff]  ;;  %2125 = vmatpush3.bf16.msra.mxu1 %v2124_v21  ;;  %v2153_v21 = vpack.c.bf16 %v1245_v20, %v1244_v19 }
  0xf2   :  { %1959 = vmatprep.subr.bf16.mxu0 %v1958_v25  ;;  %2127 = vmatprep.subr.bf16.mxu1 %v2126_v22  ;;  %v1246_v22 = vld [vmem:[%s3690_s5 + $0x10] sm:$0xf] }
  0xf5   :  { %1961 = vmatpush1.bf16.msra.mxu0 %v1960_v13  ;;  %v432_v13 = vrot.slane %v419_v30, %v431_v29  ;;  %v1334_v29 = vld [vmem:[%s3692_s7 + $0x8] sm:$0xff] }
  0xf6   :  { %1963 = vmatprep.subr.bf16.mxu0 %v1962_v33 }
  0xf9   :  { %1965 = vmatpush1.bf16.msra.mxu0 %v1964_v46 }
  0xfa   :  { %1967 = vmatprep.subr.bf16.mxu0 %v1966_v42 }
  0xfd   :  { %1969 = vmatpush1.bf16.msra.mxu0 %v1968_v61 }
  0xfe   :  { %1971 = vmatprep.subr.bf16.mxu0 %v1970_v62 }
 0x101   :  { %1973 = vmatpush1.bf16.msra.mxu0 %v1972_v7  ;;  %v1494_v26 = vpop.f32.mrb[0].mxu1  ;;  %v1085_v7 = vld [vmem:[%s3688_s3 + $0x130] sm:$0xff] }
 0x102   :  { %v1495_v27 = vpop.f32.mrb[1].mxu1  ;;  %v2144_v10 = vpack.c.bf16 %v1086_v9, %v1085_v7 }
 0x103   :  { %v1496_v28 = vadd.f32 %v1495_v27, %v1494_v26  ;;  %v1454_v26 = vld [vmem:[%s3689_s4] ss:$0 sm:$0xff] }
 0x104   :  { %758 = vmatmul.mubr.f32.vlgmr.msra.gmra.mrb[0].mxu0 %v2971_v41  ;;  %v1060_v41 = vld [vmem:[%s3688_s3 + $0x68] sm:$0xff] }
 0x105   :  { %v2128_v25 = vpack.c.bf16 %v1060_v41, %v1059_v24  ;;  %v831_v55 = vadd.f32 %v1496_v28, %v432_v13  ;;  %v1333_v28 = vld [vmem:[%s3692_s7] sm:$0xff] }
 0x107   :  { %2129 = vmatpush3.bf16.msra.mxu1 %v2128_v25 }
 0x108   :  { %2131 = vmatprep.subr.bf16.mxu1 %v2130_v39 }
 0x10b   :  { %2133 = vmatpush3.bf16.msra.mxu1 %v2132_v44 }
 0x10c   :  { %2134 = vmatprep.subr.bf16.mxu1 %v2208_v45 }
 0x121   :  { %v1529_v31 = vpop.f32.mrb[2].mxu1 }
 0x122   :  { %v1530_v32 = vpop.f32.mrb[3].mxu1 }
 0x123   :  { %v1531_v33 = vadd.f32 %v1530_v32, %v1529_v31  ;;  %v2156_v31 = vpack.c.bf16 %v1334_v29, %v1333_v28 }
 0x125   :  { %v901_v8 = vadd.f32 %v1531_v33, %v831_v55  ;;  %v1335_v33 = vld [vmem:[%s3692_s7 + $0x10] sm:$0xff] }
 0x141   :  { %v1564_v35 = vpop.f32.mrb[4].mxu1 }
 0x142   :  { %v1565_v23 = vpop.f32.mrb[5].mxu1 }
 0x143   :  { %v1566_v36 = vadd.f32 %v1565_v23, %v1564_v35  ;;  %v1337_v23 = vld [vmem:[%s3692_s7 + $0x20] sm:$0xff] }
 0x145   :  { %v971_v37 = vadd.f32 %v1566_v36, %v901_v8  ;;  %v1336_v8 = vld [vmem:[%s3692_s7 + $0x18] sm:$0xff]  ;;  %v1338_v36 = vld [vmem:[%s3692_s7 + $0x28] sm:$0xff]  ;;  %s1446_s7 = sshll.u32 %s2211_s6, 4  ;;  %s1447_s7 = int_to_ptr.vmem [resolvable:$true] %s1446_s7 }
 0x146   :  { %v2159_v35 = vpack.c.bf16 %v1336_v8, %v1335_v33  ;;  %p2188_p1 = scmp.lt.s32.totalorder %s1447_s7, %s1447_s7 }
 0x16c   :  { %v1599_v46 = vpop.f32.mrb[6].mxu1 }
 0x16d   :  { %v1600_v47 = vpop.f32.mrb[7].mxu1 }
 0x16e   :  { %v1601_v42 = vadd.f32 %v1600_v47, %v1599_v46 }
 0x170   :  { %v1041_v48 = vadd.f32 %v1601_v42, %v971_v37  ;;  %v2162_v37 = vpack.c.bf16 %v1338_v36, %v1337_v23 }
 0x172   :  { %v1046_v18 = vmax.f32 %v1041_v48, 0.0 }
 0x1d7   :  { %v759_v53 = vpop.f32.mrb[0].mxu0 }
 0x1d8   :  { %v2164_v57 = vadd.f32 %v759_v53, %v424_v51  ;;  %v761_v58 = vpop.f32.mrb[1].mxu0 }
 0x1d9   :  { %v2165_v61 = vadd.f32 %v761_v58, %v428_v52 }
 0x1da   :  { %v1044_v0 = vmax.f32 %v2164_v57, 0.0 }
 0x1db   :  { %v1045_v62 = vmax.f32 %v2165_v61, 0.0 }
 0x1dd   :  { %1167 = vmatprep.mubr.f32.mxu1 %v1045_v62 }
 0x1de   :  { %1168 = vmatmul.mubr.f32.vlgmr.msra.gmra.mrb[8].mxu1 %v1044_v0 }
 0x1df   :  { %2136 = vmatpush3.bf16.msra.mxu1 %v2135_v63  ;;  %1689 = vmatprep.mubr.msk.f32.mxu1 %vm2209_vm0, %v2210_v3 }
 0x1e0   :  { %2137 = vmatprep.subr.bf16.mxu1 %v2208_v45 }
 0x1e3   :  { %2139 = vmatpush3.bf16.msra.mxu1 %v2138_v2 }
 0x1e4   :  { %2140 = vmatprep.subr.bf16.mxu1 %v2208_v45 }
 0x1e7   :  { %2142 = vmatpush3.bf16.msra.mxu1 %v2141_v6 }
 0x1e8   :  { %2143 = vmatprep.subr.bf16.mxu1 %v2208_v45 }
 0x1eb   :  { %2145 = vmatpush3.bf16.msra.mxu1 %v2144_v10 }
 0x1ec   :  { %2146 = vmatprep.subr.bf16.mxu1 %v2208_v45 }
 0x1ef   :  { %2148 = vmatpush3.bf16.msra.mxu1 %v2147_v54 }
 0x1f0   :  { %2149 = vmatprep.subr.bf16.mxu1 %v2208_v45 }
 0x1f3   :  { %2151 = vmatpush3.bf16.msra.mxu1 %v2150_v56 }
 0x1f4   :  { %1687 = vmatprep.subr.mxu1 %v2210_v3 }
 0x1f7   :  { %1688 = vmatpush3.msra.mxu1 %v1091_v17 }
 0x1f8   :  { %1690 = vmatmul.mubr.msk.f32.vlgmr.msra.gmra.mrb[10].mxu1 %vm1099_vm1, %v1046_v18  ;;  %2152 = vmatprep.subr.bf16.mxu1 %v2208_v45 }
 0x1f9   :  { %1698 = vmatprep.mubr.msk.f32.mxu1 %vm2209_vm0, %v2210_v3  ;;  %2154 = vmatpush3.bf16.msra.mxu1 %v2153_v21 }
 0x1fa   :  { %1696 = vmatprep.subr.mxu1 %v2210_v3 }
 0x1fd   :  { %1697 = vmatpush3.msk.msra.mxu1 %vm1258_vm2, %v1246_v22 }
 0x1fe   :  { %2155 = vmatprep.subr.bf16.mxu1 %v2208_v45 }
 0x2b1   :  { %v1634_v24 = vpop.f32.mrb[8].mxu1 }
 0x2b2   :  { %v1635_v41 = vpop.f32.mrb[9].mxu1 }
 0x2b3   :  { %v1636_v25 = vadd.f32 %v1635_v41, %v1634_v24 }
 0x2b5   :  { %v1170_v27 = vadd.f32 %v1636_v25, %v1454_v26 }
 0x2cb   :  { %v1239_v30 = vpop.f32.mrb[10].mxu1 }
 0x2cc   :  { %v1240_v13 = vadd.f32 %v1239_v30, %v1170_v27  ;;  %v1691_v55 = vpop.f32.mrb[11].mxu1 }
 0x2ce   :  { %v1243_v32 = vmax.f32 %v1240_v13, 0.0 }
 0x2d0   :  { %1699 = vmatmul.mubr.msk.f32.vlgmr.msra.gmra.mrb[12].mxu1 %vm1254_vm3, %v1243_v32 }
 0x2d1   :  { %2157 = vmatpush3.bf16.msra.mxu1 %v2156_v31  ;;  %1715 = vmatprep.mubr.msk.f32.mxu1 %vm2209_vm0, %v2210_v3 }
 0x2d2   :  { %2158 = vmatprep.subr.bf16.mxu1 %v2208_v45 }
 0x2d5   :  { %2160 = vmatpush3.bf16.msra.mxu1 %v2159_v35 }
 0x2d6   :  { %2161 = vmatprep.subr.bf16.mxu1 %v2208_v45  ;;  %v1459_v45 = vld [vmem:[%s3693_s8] ss:$0 sm:$0xff]  ;;  %s2183_s8 = scalar_lea.vmem %s1447_s7, 32 }
 0x2d7   :  { %p2184_p0 = scmp.ne.s32.totalorder %s1447_s7, %s2183_s8  ;;  %p2189_p2 = scmp.lt.s32.totalorder %s2183_s8, %s2183_s8 }
 0x2d9   :  { %2163 = vmatpush3.bf16.msra.mxu1 %v2162_v37  ;;  %p2190_p3 = por %p2189_p2, %p2188_p1 }
 0x2da   :  { %1713 = vmatprep.subr.mxu1 %v2210_v3 }
 0x2db   :  { %p2191_p4 = pnand %p2190_p3, %p2184_p0 }
 0x2dd   :  { %1714 = vmatpush3.msk.msra.mxu1 %vm1351_vm4, %v1339_v16 }
 0x3a3   :  { %v1328_v39 = vpop.f32.mrb[12].mxu1 }
 0x3a4   :  { %v1329_v40 = vadd.f32 %v1456_v38, %v1328_v39  ;;  %v1700_v43 = vpop.f32.mrb[13].mxu1 }
 0x3a6   :  { %v1332_v44 = vmax.f32 %v1329_v40, 0.0 }
 0x3a8   :  { %1716 = vmatmul.mubr.msk.f32.vlgmr.msra.gmra.mrb[14].mxu1 %vm1347_vm5, %v1332_v44 }
 0x47b   :  { %v1421_v46 = vpop.f32.mrb[14].mxu1 }
 0x47c   :  { %v1422_v47 = vadd.f32 %v1459_v45, %v1421_v46  ;;  %v1717_v42 = vpop.f32.mrb[15].mxu1 }
 0x47e   :  { %v1426_v48 = vsel %vm1425_vm6, %v1422_v47, -inf }
 0x47f   :  { %1427 = vmax.xlane.f32.xlu0 %v1426_v48 }
 0x50c   :  { %v1428_v49 = vpop.xlane.xlu0 %1427 }
 0x50d   :  { %v1429_v50 = vsub.f32 %v1422_v47, %v1428_v49 }
 0x50f   :  { %v1430_v51 = vmul.f32 1.442695, %v1429_v50 }
 0x511   :  { %2179 = vpow2.f32 %v1430_v51 }
 0x51b   :  { %v2180_v52 = vpop.eup %2179 }
 0x51c   :  { %v1432_v53 = vsel %vm1425_vm6, %v2180_v52, 0.0 }
 0x51d   :  { %1433 = vadd.xlane.f32.xlu0 %v1432_v53 }
 0x5aa   :  { %v1434_v57 = vpop.xlane.xlu0 %1433 }
 0x5ab   :  { %2181 = vlog2.f32 %v1434_v57 }
 0x5b5   :  { %v2182_v58 = vpop.eup %2181 }
 0x5b6   :  { %v1436_v59 = vmul.f32 0.6931472, %v2182_v58 }
 0x5b8   :  { %v1437_v60 = vadd.f32 %v1436_v59, %v1428_v49 }
 0x5ba   :  { %v1438_v61 = vsub.f32 %v1422_v47, %v1437_v60 }
 0x5bc   :  { %1439 = vst.msk [vmem:[#allocation2] sm:$0x3] %vm1425_vm6, %v1438_v61 }
 0x5bd   :  { %2194 = shalt.err (!%p2191_p4)
}
 0x5be   :  { %s2195_s26 = scalar_lea.hbm %s3694_s9, 32 }
 0x5bf   :  { %p2196_p5 = scmp.ne.s32.totalorder %s3694_s9, %s2195_s26  ;;  %p2199_p6 = scmp.lt.u32.totalorder %s2195_s26, %s3694_s9 }
 0x5c1   :  { %p2201_p7 = pnand %p2199_p6, %p2196_p5 }
 0x5c3   :  { %2204 = shalt.err (!%p2201_p7)
}
 0x5c4   :  { %1449 = dma.vmem_to_hbm [thread:$0]  %s1447_s7, 32, %s3694_s9, [#allocation3]  }
 0x5c5   :  { %2205 = dma.done.wait [#allocation3], 32  }
 0x5c6   :  { %2206 = vsyncadd [#allocation3], 4294967264 }
 0x5c7   :  { %1453 = vsyncpa [#allocation3], 1 }

</bundles_post_ra>
